<compile_context>
chip_gen: v6e
topology: v6e:2x2x1
jax: 0.10.0
libtpu: 0.0.40
codegen_flags: <defaults>
</compile_context>

<pallas_src>
import numpy as np
import jax
import jax.numpy as jnp
from jax import lax
from jax.experimental import pallas as pl
from jax.experimental.pallas import tpu as pltpu

# ---- config constants (deterministic stand-ins for C.*) ----
DELTA = 0.9            # C.delta
EPSILON = 0.1          # C.epsilon
CROSS_ENTROPY_W = 1.0  # C.cross_entropy
CLAMP_MIN = 1e-4
CLAMP_MAX = 0.9999
LANE = 128
NEG_INF = -1e30


def _round_up(v, m):
    return ((int(v) + m - 1) // m) * m


def make_kernel(each_len, n_real, n_pad, f_pad, h_pad):
    """Fused forward kernel for a static `each_len` split (padded shapes)."""
    each_len = [int(e) for e in each_len]
    offs = np.concatenate([[0], np.cumsum(each_len)]).astype(np.int64)
    scales = [float(np.log(DELTA / (1.0 - DELTA) * l) / EPSILON) for l in each_len]
    n_blocks = len(each_len)

    def kernel(x_ref, few_ref, feb_ref, w1_ref, b1_ref, w2_ref, b2_ref, gt_ref,
               pred_ref, loss_ref, acc_ref):
        k = pl.program_id(0)

        # ---- (1) feature extractor (ResNet-50 stand-in): K-tiled bf16 matmul
        @pl.when(k == 0)
        def _():
            acc_ref[...] = jnp.zeros_like(acc_ref)

        acc_ref[...] += jnp.dot(x_ref[...], few_ref[...],
                                preferred_element_type=jnp.float32)

        @pl.when(k == pl.num_programs(0) - 1)
        def _():
            feat = acc_ref[...] + feb_ref[...]

            # ---- (2) f.normalize(feature_map, dim=-1) via EUP rsqrt
            inv_norm = lax.rsqrt(jnp.sum(feat * feat, axis=-1, keepdims=True) + 1e-24)
            nf = feat * inv_norm

            # ---- (3) S = nf @ nf.T without materializing a transpose
            S = lax.dot_general(nf, nf, (((1,), (1,)), ((), ())),
                                preferred_element_type=jnp.float32)

            # ---- (4) block-wise temperature softmax over column blocks.
            # Masks are built from iota (compile-time block bounds), so no
            # array constants are captured by the trace.
            col_ids = lax.broadcasted_iota(jnp.int32, (n_pad, n_pad), 1)
            one_pred = jnp.zeros((n_pad, n_pad), jnp.float32)
            for j in range(n_blocks):
                c0, c1 = int(offs[j]), int(offs[j + 1])
                in_blk = (col_ids >= c0) & (col_ids < c1)
                z = jnp.where(in_blk, S * scales[j], NEG_INF)
                mx = jnp.max(z, axis=1, keepdims=True)
                e = jnp.where(in_blk, jnp.exp(z - mx), 0.0)
                d = jnp.sum(e, axis=1, keepdims=True)
                one_pred = one_pred + e * pl.reciprocal(d, approx=True)

            # ---- (5) STAN_FC deep-Hungarian-net stand-in: row-wise MLP + sigmoid
            # TODO(synk): exact STAN_FC architecture is not public here; a 2-layer
            # row-wise MLP with sigmoid output is used as a deterministic stand-in.
            h = jnp.dot(one_pred, w1_ref[...], preferred_element_type=jnp.float32)
            h = jnp.maximum(h + b1_ref[...], 0.0)
            logits = jnp.dot(h, w2_ref[...], preferred_element_type=jnp.float32) + b2_ref[...]
            pred = 0.5 * (jnp.tanh(0.5 * logits) + 1.0)   # overflow-free sigmoid
            final_pred = jnp.clip(pred, CLAMP_MIN, CLAMP_MAX)
            pred_ref[...] = final_pred

            # ---- (6) weighted binary focal cross-entropy vs GT (real N x N only)
            row_ids = lax.broadcasted_iota(jnp.int32, (n_pad, n_pad), 0)
            valid = (row_ids < n_real) & (col_ids < n_real)
            y = gt_ref[...]
            numel = float(n_real * n_real)
            n_pos = jnp.sum(jnp.where(valid, y, 0.0))
            w_pos = numel / (2.0 * n_pos + 1e-6)
            w_neg = numel / (2.0 * (numel - n_pos) + 1e-6)
            one_m_p = 1.0 - final_pred
            ll = (w_pos * y * (one_m_p * one_m_p) * jnp.log(final_pred)
                  + w_neg * (1.0 - y) * (final_pred * final_pred) * jnp.log(one_m_p))
            s = jnp.sum(jnp.where(valid, ll, 0.0))
            loss_ref[0, 0] = CROSS_ENTROPY_W * (-s / numel)

    return kernel


def resnet_dhn_forward(image_crop, gt_matrix, params, each_len, *, tk=512):
    """Pure-JAX wrapper: flatten + pad NCHW crops, call the fused Pallas kernel."""
    N, C, H, W = image_crop.shape
    assert int(sum(each_len)) == N, "sum(each_len) must equal the number of crops"
    d_in = C * H * W
    feat_dim = params["fe_w"].shape[1]
    hidden_dim = params["w1"].shape[1]

    # Lane-dense padded sizes.
    n_pad = _round_up(max(N, 8), LANE)
    f_pad = _round_up(feat_dim, LANE)
    h_pad = _round_up(hidden_dim, LANE)
    tk = min(tk, _round_up(d_in, LANE))
    d_pad = _round_up(d_in, tk)
    k_steps = d_pad // tk

    f32, bf16 = jnp.float32, jnp.bfloat16

    x_flat = image_crop.reshape(N, d_in).astype(f32)
    x_p = jnp.zeros((n_pad, d_pad), bf16).at[:N, :d_in].set(x_flat.astype(bf16))
    few_p = jnp.zeros((d_pad, f_pad), bf16).at[:d_in, :feat_dim].set(
        params["fe_w"].astype(bf16))
    feb_p = jnp.zeros((1, f_pad), f32).at[:, :feat_dim].set(params["fe_b"].astype(f32))
    w1_p = jnp.zeros((n_pad, h_pad), f32).at[:N, :hidden_dim].set(params["w1"].astype(f32))
    b1_p = jnp.zeros((1, h_pad), f32).at[:, :hidden_dim].set(params["b1"].astype(f32))
    w2_p = jnp.zeros((h_pad, n_pad), f32).at[:hidden_dim, :N].set(params["w2"].astype(f32))
    b2_p = jnp.zeros((1, n_pad), f32).at[:, :N].set(params["b2"].astype(f32))
    gt_p = jnp.zeros((n_pad, n_pad), f32).at[:N, :N].set(gt_matrix.astype(f32))

    kernel = make_kernel(each_len, N, n_pad, f_pad, h_pad)

    cost = pl.CostEstimate(
        flops=int(2 * n_pad * d_pad * f_pad          # feature extractor matmul
                  + 2 * n_pad * n_pad * f_pad        # similarity
                  + 4 * n_pad * n_pad * h_pad),      # STAN MLP
        transcendentals=int((len(each_len) + 3) * n_pad * n_pad),
        bytes_accessed=int(x_p.size * 2 + few_p.size * 2
                           + (w1_p.size + w2_p.size + gt_p.size
                              + 2 * n_pad * n_pad) * 4),
    )

    pred_pad, loss = pl.pallas_call(
        kernel,
        out_shape=(jax.ShapeDtypeStruct((n_pad, n_pad), f32),
                   jax.ShapeDtypeStruct((1, 1), f32)),
        grid=(k_steps,),
        in_specs=[
            pl.BlockSpec((n_pad, tk), lambda k: (0, k)),      # x (K-streamed)
            pl.BlockSpec((tk, f_pad), lambda k: (k, 0)),      # fe_w (K-streamed)
            pl.BlockSpec((1, f_pad), lambda k: (0, 0)),       # fe_b (resident)
            pl.BlockSpec((n_pad, h_pad), lambda k: (0, 0)),   # w1
            pl.BlockSpec((1, h_pad), lambda k: (0, 0)),       # b1
            pl.BlockSpec((h_pad, n_pad), lambda k: (0, 0)),   # w2
            pl.BlockSpec((1, n_pad), lambda k: (0, 0)),       # b2
            pl.BlockSpec((n_pad, n_pad), lambda k: (0, 0)),   # gt
        ],
        out_specs=(
            pl.BlockSpec((n_pad, n_pad), lambda k: (0, 0)),                # pred (lane-dense)
            pl.BlockSpec(memory_space=pltpu.MemorySpace.SMEM),             # scalar loss
        ),
        scratch_shapes=[pltpu.VMEM((n_pad, f_pad), jnp.float32)],          # f32 accumulator
        compiler_params=pltpu.CompilerParams(
            dimension_semantics=("arbitrary",),   # K axis is a reduction
            vmem_limit_bytes=32 * 1024 * 1024,
        ),
        cost_estimate=cost,
    )(x_p, few_p, feb_p, w1_p, b1_p, w2_p, b2_p, gt_p)

    # TODO(synk): for many frame pairs, add a leading "parallel" grid axis over
    # pairs to use both TensorCores on v7x.
    return loss[0, 0], pred_pad[:N, :N]


def init_params(key, d_in, feat_dim, n_tot, hidden_dim):
    ks = jax.random.split(key, 6)
    return {
        "fe_w": 0.05 * jax.random.normal(ks[0], (d_in, feat_dim), jnp.float32),
        "fe_b": 0.01 * jax.random.normal(ks[1], (1, feat_dim), jnp.float32),
        "w1": 0.1 * jax.random.normal(ks[2], (n_tot, hidden_dim), jnp.float32),
        "b1": 0.01 * jax.random.normal(ks[3], (1, hidden_dim), jnp.float32),
        "w2": 0.1 * jax.random.normal(ks[4], (hidden_dim, n_tot), jnp.float32),
        "b2": 0.01 * jax.random.normal(ks[5], (1, n_tot), jnp.float32),
    }


if __name__ == "__main__":
    key = jax.random.PRNGKey(0)
    # 2 views with 4 crops each -> N = 8 total crops.
    each_len = [4, 4]
    N = sum(each_len)
    C_in, H, W = 4, 16, 16
    feat_dim, hidden_dim = 32, 32

    k_img, k_par = jax.random.split(key)
    image_crop = jax.random.normal(k_img, (N, C_in, H, W), jnp.float32)  # NCHW

    # Deterministic GT assignment: crop r in view 0 matches crop r in view 1.
    ids = np.arange(N) % each_len[0]
    gt_matrix = jnp.asarray((ids[:, None] == ids[None, :]).astype(np.float32))

    params = init_params(k_par, C_in * H * W, feat_dim, N, hidden_dim)

    step_loss, final_pred = resnet_dhn_forward(image_crop, gt_matrix, params, each_len)
    jax.block_until_ready((step_loss, final_pred))

    assert final_pred.shape == (N, N)
    assert bool(jnp.all(jnp.isfinite(final_pred)))
    assert bool(jnp.isfinite(step_loss))
    print("KERNEL_OK")
</pallas_src>

<mosaic_0001>
module attributes {stable_mosaic.version = 11 : i64} {
  func.func @kernel(%arg0: i32, %arg1: memref<128x512xbf16, #tpu.memory_space<vmem>>, %arg2: memref<512x128xbf16, #tpu.memory_space<vmem>>, %arg3: memref<1x128xf32, #tpu.memory_space<vmem>>, %arg4: memref<128x128xf32, #tpu.memory_space<vmem>>, %arg5: memref<1x128xf32, #tpu.memory_space<vmem>>, %arg6: memref<128x128xf32, #tpu.memory_space<vmem>>, %arg7: memref<1x128xf32, #tpu.memory_space<vmem>>, %arg8: memref<128x128xf32, #tpu.memory_space<vmem>>, %arg9: memref<128x128xf32, #tpu.memory_space<vmem>>, %arg10: memref<1x1xf32, #tpu.memory_space<smem>>, %arg11: memref<128x128xf32, #tpu.memory_space<vmem>>) attributes {dimension_semantics = [#tpu.dimension_semantics<arbitrary>], iteration_bounds = array<i64: 2>, scalar_prefetch = 0 : i64, scratch_operands = 1 : i64, tpu.core_type = #tpu.core_type<tc>, window_params = [{transform_indices = @transform_0, window_bounds = array<i64: 128, 512>}, {transform_indices = @transform_1, window_bounds = array<i64: 512, 128>}, {pipeline_mode = #tpu.pipeline_mode<synchronous>, transform_indices = @transform_2, window_bounds = array<i64: 1, 128>}, {pipeline_mode = #tpu.pipeline_mode<synchronous>, transform_indices = @transform_3, window_bounds = array<i64: 128, 128>}, {pipeline_mode = #tpu.pipeline_mode<synchronous>, transform_indices = @transform_4, window_bounds = array<i64: 1, 128>}, {pipeline_mode = #tpu.pipeline_mode<synchronous>, transform_indices = @transform_5, window_bounds = array<i64: 128, 128>}, {pipeline_mode = #tpu.pipeline_mode<synchronous>, transform_indices = @transform_6, window_bounds = array<i64: 1, 128>}, {pipeline_mode = #tpu.pipeline_mode<synchronous>, transform_indices = @transform_7, window_bounds = array<i64: 128, 128>}, {pipeline_mode = #tpu.pipeline_mode<synchronous>, transform_indices = @transform_8, window_bounds = array<i64: 128, 128>}, {transform_indices = @transform_9, window_bounds = array<i64: 1, 1>}]} {
    %c0_i32 = arith.constant 0 : i32
    %0 = arith.cmpi eq, %arg0, %c0_i32 : i32
    %1 = arith.extui %0 : i1 to i32
    %c0_i32_0 = arith.constant 0 : i32
    %2 = arith.cmpi ne, %1, %c0_i32_0 : i32
    scf.if %2 {
      %cst_9 = arith.constant 0.000000e+00 : f32
      %12 = vector.broadcast %cst_9 : f32 to vector<128x128xf32>
      %c0_10 = arith.constant 0 : index
      %c0_11 = arith.constant 0 : index
      %13 = vector.load %arg11[%c0_10, %c0_11] : memref<128x128xf32, #tpu.memory_space<vmem>>, vector<128x128xf32>
      tpu.vector_store %arg11[%c0_10, %c0_11], %12 {strides = array<i32>} : memref<128x128xf32, #tpu.memory_space<vmem>>, vector<128x128xf32>,
    } else {
    }
    %c0 = arith.constant 0 : index
    %c0_1 = arith.constant 0 : index
    %3 = vector.load %arg11[%c0, %c0_1] : memref<128x128xf32, #tpu.memory_space<vmem>>, vector<128x128xf32>
    %c0_2 = arith.constant 0 : index
    %c0_3 = arith.constant 0 : index
    %4 = vector.load %arg1[%c0_2, %c0_3] : memref<128x512xbf16, #tpu.memory_space<vmem>>, vector<128x512xbf16>
    %c0_4 = arith.constant 0 : index
    %c0_5 = arith.constant 0 : index
    %5 = vector.load %arg2[%c0_4, %c0_5] : memref<512x128xbf16, #tpu.memory_space<vmem>>, vector<512x128xbf16>
    %cst = arith.constant dense<0.000000e+00> : vector<128x128xf32>
    %6 = tpu.matmul %4, %5, %cst {dimension_numbers = #tpu.dot_dimension_numbers<[1], [0], [0], [1], [0, 0, 1, 1], [], []>} : vector<128x512xbf16>, vector<512x128xbf16>, vector<128x128xf32> -> vector<128x128xf32>
    %7 = arith.addf %3, %6 : vector<128x128xf32>
    %c0_6 = arith.constant 0 : index
    %c0_7 = arith.constant 0 : index
    %8 = vector.load %arg11[%c0_6, %c0_7] : memref<128x128xf32, #tpu.memory_space<vmem>>, vector<128x128xf32>
    tpu.vector_store %arg11[%c0_6, %c0_7], %7 {strides = array<i32>} : memref<128x128xf32, #tpu.memory_space<vmem>>, vector<128x128xf32>,
    %c1_i32 = arith.constant 1 : i32
    %9 = arith.cmpi eq, %arg0, %c1_i32 : i32
    %10 = arith.extui %9 : i1 to i32
    %c0_i32_8 = arith.constant 0 : i32
    %11 = arith.cmpi ne, %10, %c0_i32_8 : i32
    scf.if %11 {
      %c0_9 = arith.constant 0 : index
      %c0_10 = arith.constant 0 : index
      %12 = vector.load %arg11[%c0_9, %c0_10] : memref<128x128xf32, #tpu.memory_space<vmem>>, vector<128x128xf32>
      %c0_11 = arith.constant 0 : index
      %c0_12 = arith.constant 0 : index
      %13 = vector.load %arg3[%c0_11, %c0_12] : memref<1x128xf32, #tpu.memory_space<vmem>>, vector<1x128xf32>
      %14 = vector.broadcast %13 : vector<1x128xf32> to vector<128x128xf32>
      %15 = arith.addf %12, %14 : vector<128x128xf32>
      %16 = arith.mulf %15, %15 : vector<128x128xf32>
      %cst_13 = arith.constant dense<0.000000e+00> : vector<128xf32>
      %17 = vector.multi_reduction <add>, %16, %cst_13 [1] : vector<128x128xf32> to vector<128xf32>
      %18 = vector.shape_cast %17 : vector<128xf32> to vector<128x1xf32>
      %cst_14 = arith.constant 1.000000e-24 : f32
      %19 = vector.broadcast %cst_14 : f32 to vector<128x1xf32>
      %20 = arith.addf %18, %19 : vector<128x1xf32>
      %21 = math.rsqrt %20 : vector<128x1xf32>
      %22 = vector.broadcast %21 : vector<128x1xf32> to vector<128x128xf32>
      %23 = arith.mulf %15, %22 : vector<128x128xf32>
      %cst_15 = arith.constant dense<0.000000e+00> : vector<128x128xf32>
      %24 = tpu.matmul %23, %23, %cst_15 {dimension_numbers = #tpu.dot_dimension_numbers<[1], [1], [0], [0], [0, 0, 1, 0], [], []>} : vector<128x128xf32>, vector<128x128xf32>, vector<128x128xf32> -> vector<128x128xf32>
      %25 = tpu.iota {dimensions = array<i32: 1>} : vector<128x128xi32>
      %cst_16 = arith.constant 0.000000e+00 : f32
      %26 = vector.broadcast %cst_16 : f32 to vector<128x128xf32>
      %c0_i32_17 = arith.constant 0 : i32
      %27 = vector.broadcast %c0_i32_17 : i32 to vector<128x128xi32>
      %28 = arith.cmpi sge, %25, %27 : vector<128x128xi32>
      %c4_i32 = arith.constant 4 : i32
      %29 = vector.broadcast %c4_i32 : i32 to vector<128x128xi32>
      %30 = arith.cmpi slt, %25, %29 : vector<128x128xi32>
      %31 = arith.andi %28, %30 : vector<128x128xi1>
      %cst_18 = arith.constant 35.8351898 : f32
      %32 = vector.broadcast %cst_18 : f32 to vector<128x128xf32>
      %33 = arith.mulf %24, %32 : vector<128x128xf32>
      %cst_19 = arith.constant -1.000000e+30 : f32
      %34 = vector.broadcast %cst_19 : f32 to vector<128x128xf32>
      %35 = arith.select %31, %33, %34 : vector<128x128xi1>, vector<128x128xf32>
      %cst_20 = arith.constant dense<0xFF800000> : vector<128xf32>
      %36 = vector.multi_reduction <maximumf>, %35, %cst_20 [1] : vector<128x128xf32> to vector<128xf32>
      %37 = vector.shape_cast %36 : vector<128xf32> to vector<128x1xf32>
      %38 = vector.broadcast %37 : vector<128x1xf32> to vector<128x128xf32>
      %39 = arith.subf %35, %38 : vector<128x128xf32>
      %40 = math.exp %39 : vector<128x128xf32>
      %cst_21 = arith.constant 0.000000e+00 : f32
      %41 = vector.broadcast %cst_21 : f32 to vector<128x128xf32>
      %42 = arith.select %31, %40, %41 : vector<128x128xi1>, vector<128x128xf32>
      %cst_22 = arith.constant dense<0.000000e+00> : vector<128xf32>
      %43 = vector.multi_reduction <add>, %42, %cst_22 [1] : vector<128x128xf32> to vector<128xf32>
      %44 = vector.shape_cast %43 : vector<128xf32> to vector<128x1xf32>
      %45 = tpu.reciprocal %44 {approx = true} : vector<128x1xf32> -> vector<128x1xf32>
      %46 = vector.broadcast %45 : vector<128x1xf32> to vector<128x128xf32>
      %47 = arith.mulf %42, %46 : vector<128x128xf32>
      %48 = arith.addf %26, %47 : vector<128x128xf32>
      %c4_i32_23 = arith.constant 4 : i32
      %49 = vector.broadcast %c4_i32_23 : i32 to vector<128x128xi32>
      %50 = arith.cmpi sge, %25, %49 : vector<128x128xi32>
      %c8_i32 = arith.constant 8 : i32
      %51 = vector.broadcast %c8_i32 : i32 to vector<128x128xi32>
      %52 = arith.cmpi slt, %25, %51 : vector<128x128xi32>
      %53 = arith.andi %50, %52 : vector<128x128xi1>
      %cst_24 = arith.constant 35.8351898 : f32
      %54 = vector.broadcast %cst_24 : f32 to vector<128x128xf32>
      %55 = arith.mulf %24, %54 : vector<128x128xf32>
      %cst_25 = arith.constant -1.000000e+30 : f32
      %56 = vector.broadcast %cst_25 : f32 to vector<128x128xf32>
      %57 = arith.select %53, %55, %56 : vector<128x128xi1>, vector<128x128xf32>
      %cst_26 = arith.constant dense<0xFF800000> : vector<128xf32>
      %58 = vector.multi_reduction <maximumf>, %57, %cst_26 [1] : vector<128x128xf32> to vector<128xf32>
      %59 = vector.shape_cast %58 : vector<128xf32> to vector<128x1xf32>
      %60 = vector.broadcast %59 : vector<128x1xf32> to vector<128x128xf32>
      %61 = arith.subf %57, %60 : vector<128x128xf32>
      %62 = math.exp %61 : vector<128x128xf32>
      %cst_27 = arith.constant 0.000000e+00 : f32
      %63 = vector.broadcast %cst_27 : f32 to vector<128x128xf32>
      %64 = arith.select %53, %62, %63 : vector<128x128xi1>, vector<128x128xf32>
      %cst_28 = arith.constant dense<0.000000e+00> : vector<128xf32>
      %65 = vector.multi_reduction <add>, %64, %cst_28 [1] : vector<128x128xf32> to vector<128xf32>
      %66 = vector.shape_cast %65 : vector<128xf32> to vector<128x1xf32>
      %67 = tpu.reciprocal %66 {approx = true} : vector<128x1xf32> -> vector<128x1xf32>
      %68 = vector.broadcast %67 : vector<128x1xf32> to vector<128x128xf32>
      %69 = arith.mulf %64, %68 : vector<128x128xf32>
      %70 = arith.addf %48, %69 : vector<128x128xf32>
      %c0_29 = arith.constant 0 : index
      %c0_30 = arith.constant 0 : index
      %71 = vector.load %arg4[%c0_29, %c0_30] : memref<128x128xf32, #tpu.memory_space<vmem>>, vector<128x128xf32>
      %cst_31 = arith.constant dense<0.000000e+00> : vector<128x128xf32>
      %72 = tpu.matmul %70, %71, %cst_31 {dimension_numbers = #tpu.dot_dimension_numbers<[1], [0], [0], [1], [0, 0, 1, 1], [], []>} : vector<128x128xf32>, vector<128x128xf32>, vector<128x128xf32> -> vector<128x128xf32>
      %c0_32 = arith.constant 0 : index
      %c0_33 = arith.constant 0 : index
      %73 = vector.load %arg5[%c0_32, %c0_33] : memref<1x128xf32, #tpu.memory_space<vmem>>, vector<1x128xf32>
      %74 = vector.broadcast %73 : vector<1x128xf32> to vector<128x128xf32>
      %75 = arith.addf %72, %74 : vector<128x128xf32>
      %cst_34 = arith.constant 0.000000e+00 : f32
      %76 = vector.broadcast %cst_34 : f32 to vector<128x128xf32>
      %77 = arith.maximumf %75, %76 : vector<128x128xf32>
      %c0_35 = arith.constant 0 : index
      %c0_36 = arith.constant 0 : index
      %78 = vector.load %arg6[%c0_35, %c0_36] : memref<128x128xf32, #tpu.memory_space<vmem>>, vector<128x128xf32>
      %cst_37 = arith.constant dense<0.000000e+00> : vector<128x128xf32>
      %79 = tpu.matmul %77, %78, %cst_37 {dimension_numbers = #tpu.dot_dimension_numbers<[1], [0], [0], [1], [0, 0, 1, 1], [], []>} : vector<128x128xf32>, vector<128x128xf32>, vector<128x128xf32> -> vector<128x128xf32>
      %c0_38 = arith.constant 0 : index
      %c0_39 = arith.constant 0 : index
      %80 = vector.load %arg7[%c0_38, %c0_39] : memref<1x128xf32, #tpu.memory_space<vmem>>, vector<1x128xf32>
      %81 = vector.broadcast %80 : vector<1x128xf32> to vector<128x128xf32>
      %82 = arith.addf %79, %81 : vector<128x128xf32>
      %cst_40 = arith.constant 5.000000e-01 : f32
      %83 = vector.broadcast %cst_40 : f32 to vector<128x128xf32>
      %84 = arith.mulf %83, %82 : vector<128x128xf32>
      %85 = math.tanh %84 : vector<128x128xf32>
      %cst_41 = arith.constant 1.000000e+00 : f32
      %86 = vector.broadcast %cst_41 : f32 to vector<128x128xf32>
      %87 = arith.addf %85, %86 : vector<128x128xf32>
      %cst_42 = arith.constant 5.000000e-01 : f32
      %88 = vector.broadcast %cst_42 : f32 to vector<128x128xf32>
      %89 = arith.mulf %88, %87 : vector<128x128xf32>
      %cst_43 = arith.constant 9.99999974E-5 : f32
      %cst_44 = arith.constant 0.999899983 : f32
      %90 = vector.broadcast %cst_43 : f32 to vector<128x128xf32>
      %91 = arith.maximumf %90, %89 : vector<128x128xf32>
      %92 = vector.broadcast %cst_44 : f32 to vector<128x128xf32>
      %93 = arith.minimumf %92, %91 : vector<128x128xf32>
      %c0_45 = arith.constant 0 : index
      %c0_46 = arith.constant 0 : index
      %94 = vector.load %arg9[%c0_45, %c0_46] : memref<128x128xf32, #tpu.memory_space<vmem>>, vector<128x128xf32>
      tpu.vector_store %arg9[%c0_45, %c0_46], %93 {strides = array<i32>} : memref<128x128xf32, #tpu.memory_space<vmem>>, vector<128x128xf32>,
      %95 = tpu.iota {dimensions = array<i32: 0>} : vector<128x128xi32>
      %c8_i32_47 = arith.constant 8 : i32
      %96 = vector.broadcast %c8_i32_47 : i32 to vector<128x128xi32>
      %97 = arith.cmpi slt, %95, %96 : vector<128x128xi32>
      %c8_i32_48 = arith.constant 8 : i32
      %98 = vector.broadcast %c8_i32_48 : i32 to vector<128x128xi32>
      %99 = arith.cmpi slt, %25, %98 : vector<128x128xi32>
      %100 = arith.andi %97, %99 : vector<128x128xi1>
      %c0_49 = arith.constant 0 : index
      %c0_50 = arith.constant 0 : index
      %101 = vector.load %arg8[%c0_49, %c0_50] : memref<128x128xf32, #tpu.memory_space<vmem>>, vector<128x128xf32>
      %cst_51 = arith.constant 0.000000e+00 : f32
      %102 = vector.broadcast %cst_51 : f32 to vector<128x128xf32>
      %103 = arith.select %100, %101, %102 : vector<128x128xi1>, vector<128x128xf32>
      %104 = vector.shape_cast %103 : vector<128x128xf32> to vector<1x128x128xf32>
      %cst_52 = arith.constant dense<0.000000e+00> : vector<1xf32>
      %105 = vector.multi_reduction <add>, %104, %cst_52 [1, 2] : vector<1x128x128xf32> to vector<1xf32>
      %106 = vector.shape_cast %105 : vector<1xf32> to vector<1x1x1xf32>
      %107 = vector.extract %106[0, 0, 0] : f32 from vector<1x1x1xf32>
      %cst_53 = arith.constant 2.000000e+00 : f32
      %108 = arith.mulf %cst_53, %107 : f32
      %cst_54 = arith.constant 9.99999997E-7 : f32
      %109 = arith.addf %108, %cst_54 : f32
      %cst_55 = arith.constant 6.400000e+01 : f32
      %110 = arith.divf %cst_55, %109 : f32
      %cst_56 = arith.constant 6.400000e+01 : f32
      %111 = arith.subf %cst_56, %107 : f32
      %cst_57 = arith.constant 2.000000e+00 : f32
      %112 = arith.mulf %cst_57, %111 : f32
      %cst_58 = arith.constant 9.99999997E-7 : f32
      %113 = arith.addf %112, %cst_58 : f32
      %cst_59 = arith.constant 6.400000e+01 : f32
      %114 = arith.divf %cst_59, %113 : f32
      %cst_60 = arith.constant 1.000000e+00 : f32
      %115 = vector.broadcast %cst_60 : f32 to vector<128x128xf32>
      %116 = arith.subf %115, %93 : vector<128x128xf32>
      %117 = vector.broadcast %110 : f32 to vector<128x128xf32>
      %118 = arith.mulf %117, %101 : vector<128x128xf32>
      %119 = arith.mulf %116, %116 : vector<128x128xf32>
      %120 = arith.mulf %118, %119 : vector<128x128xf32>
      %121 = math.log %93 : vector<128x128xf32>
      %122 = arith.mulf %120, %121 : vector<128x128xf32>
      %cst_61 = arith.constant 1.000000e+00 : f32
      %123 = vector.broadcast %cst_61 : f32 to vector<128x128xf32>
      %124 = arith.subf %123, %101 : vector<128x128xf32>
      %125 = vector.broadcast %114 : f32 to vector<128x128xf32>
      %126 = arith.mulf %125, %124 : vector<128x128xf32>
      %127 = arith.mulf %93, %93 : vector<128x128xf32>
      %128 = arith.mulf %126, %127 : vector<128x128xf32>
      %129 = math.log %116 : vector<128x128xf32>
      %130 = arith.mulf %128, %129 : vector<128x128xf32>
      %131 = arith.addf %122, %130 : vector<128x128xf32>
      %cst_62 = arith.constant 0.000000e+00 : f32
      %132 = vector.broadcast %cst_62 : f32 to vector<128x128xf32>
      %133 = arith.select %100, %131, %132 : vector<128x128xi1>, vector<128x128xf32>
      %134 = vector.shape_cast %133 : vector<128x128xf32> to vector<1x128x128xf32>
      %cst_63 = arith.constant dense<0.000000e+00> : vector<1xf32>
      %135 = vector.multi_reduction <add>, %134, %cst_63 [1, 2] : vector<1x128x128xf32> to vector<1xf32>
      %136 = vector.shape_cast %135 : vector<1xf32> to vector<1x1x1xf32>
      %137 = vector.extract %136[0, 0, 0] : f32 from vector<1x1x1xf32>
      %cst_64 = arith.constant 0.000000e+00 : f32
      %138 = arith.subf %cst_64, %137 : f32
      %cst_65 = arith.constant 6.400000e+01 : f32
      %139 = arith.divf %138, %cst_65 : f32
      %cst_66 = arith.constant 1.000000e+00 : f32
      %140 = arith.mulf %cst_66, %139 : f32
      %c0_67 = arith.constant 0 : index
      %c0_68 = arith.constant 0 : index
      %141 = memref.load %arg10[%c0_67, %c0_68] : memref<1x1xf32, #tpu.memory_space<smem>>
      memref.store %140, %arg10[%c0_67, %c0_68] : memref<1x1xf32, #tpu.memory_space<smem>>
    } else {
    }
    return
  }
  func.func @transform_0(%arg0: i32) -> (i32, i32) {
    %c0_i32 = arith.constant 0 : i32
    %c0_i32_0 = arith.constant 0 : i32
    return %c0_i32, %arg0 : i32, i32
  }
  func.func @transform_1(%arg0: i32) -> (i32, i32) {
    %c0_i32 = arith.constant 0 : i32
    %c0_i32_0 = arith.constant 0 : i32
    return %arg0, %c0_i32 : i32, i32
  }
  func.func @transform_2(%arg0: i32) -> (i32, i32) {
    %c0_i32 = arith.constant 0 : i32
    %c0_i32_0 = arith.constant 0 : i32
    %c0_i32_1 = arith.constant 0 : i32
    return %c0_i32, %c0_i32_0 : i32, i32
  }
  func.func @transform_3(%arg0: i32) -> (i32, i32) {
    %c0_i32 = arith.constant 0 : i32
    %c0_i32_0 = arith.constant 0 : i32
    %c0_i32_1 = arith.constant 0 : i32
    return %c0_i32, %c0_i32_0 : i32, i32
  }
  func.func @transform_4(%arg0: i32) -> (i32, i32) {
    %c0_i32 = arith.constant 0 : i32
    %c0_i32_0 = arith.constant 0 : i32
    %c0_i32_1 = arith.constant 0 : i32
    return %c0_i32, %c0_i32_0 : i32, i32
  }
  func.func @transform_5(%arg0: i32) -> (i32, i32) {
    %c0_i32 = arith.constant 0 : i32
    %c0_i32_0 = arith.constant 0 : i32
    %c0_i32_1 = arith.constant 0 : i32
    return %c0_i32, %c0_i32_0 : i32, i32
  }
  func.func @transform_6(%arg0: i32) -> (i32, i32) {
    %c0_i32 = arith.constant 0 : i32
    %c0_i32_0 = arith.constant 0 : i32
    %c0_i32_1 = arith.constant 0 : i32
    return %c0_i32, %c0_i32_0 : i32, i32
  }
  func.func @transform_7(%arg0: i32) -> (i32, i32) {
    %c0_i32 = arith.constant 0 : i32
    %c0_i32_0 = arith.constant 0 : i32
    %c0_i32_1 = arith.constant 0 : i32
    return %c0_i32, %c0_i32_0 : i32, i32
  }
  func.func @transform_8(%arg0: i32) -> (i32, i32) {
    %c0_i32 = arith.constant 0 : i32
    %c0_i32_0 = arith.constant 0 : i32
    %c0_i32_1 = arith.constant 0 : i32
    return %c0_i32, %c0_i32_0 : i32, i32
  }
  func.func @transform_9(%arg0: i32) -> (i32, i32) {
    %c0_i32 = arith.constant 0 : i32
    %c0_i32_0 = arith.constant 0 : i32
    %c0_i32_1 = arith.constant 0 : i32
    return %c0_i32, %c0_i32_0 : i32, i32
  }
}

</mosaic_0001>

<bundles_post_ra>
// kernel: tpu_custom_call.1
= control target key start
LH: loop header
LB: loop body
LE: loop exit
PB: predicated region body
PF: predicated region fallthrough
CT: control target
= control target key end

     0   :  { %s4838_s0 = inlined_call_operand.hbm [shape: bf16[128,1024], index: 0, kind: input, shape index: {}]   ;;  %s4839_s1 = inlined_call_operand.hbm [shape: bf16[1024,128], index: 1, kind: input, shape index: {}]   ;;  %s4840_s2 = inlined_call_operand.vmem [shape: f32[1,128], index: 2, kind: input, shape index: {}]   ;;  %s4841_s3 = inlined_call_operand.hbm [shape: f32[128,128], index: 3, kind: input, shape index: {}]   ;;  %s4842_s4 = inlined_call_operand.vmem [shape: f32[1,128], index: 4, kind: input, shape index: {}]   ;;  %s4843_s5 = inlined_call_operand.hbm [shape: f32[128,128], index: 5, kind: input, shape index: {}]   ;;  %s4844_s6 = inlined_call_operand.vmem [shape: f32[1,128], index: 6, kind: input, shape index: {}]   ;;  %s4845_s7 = inlined_call_operand.hbm [shape: f32[128,128], index: 7, kind: input, shape index: {}]   ;;  %s4846_s8 = inlined_call_operand.hbm [shape: f32[128,128], index: 8, kind: output, shape index: {0}]   ;;  %s4847_s9 = inlined_call_operand.hbm [shape: f32[1,1], index: 9, kind: output, shape index: {1}]  }
   0x1   :  { %4850 = sst [smem:[#allocation21_spill]] %s4838_s0 }
   0x2   :  { %4851 = sst [smem:[#allocation22_spill]] %s4841_s3 }
   0x3   :  { %4852 = sst [smem:[#allocation23_spill]] %s4843_s5 }
   0x4   :  { %4853 = sst [smem:[#allocation24_spill]] %s4845_s7 }
   0x5   :  { %15 = vsyncpa [#allocation4], 0 }
   0x6   :  { %17 = vsyncpa [#allocation4 + $0x1], 0 }
   0x7   :  { %18 = vsyncpa [#allocation8], 0 }
   0x8   :  { %20 = vsyncpa [#allocation8 + $0x1], 0 }
   0x9   :  { %21 = vsyncpa [#allocation11], 0 }
   0xa   :  { %22 = vsyncpa [#allocation5], 0 }
   0xb   :  { %23 = vsyncpa [#allocation6], 0  ;;  %s3994_s30 = smov 0   ;;  %s3996_s10 = smov 0  }
   0xc   :  { %s3998_s11 = smov 0   ;;  %s4000_s12 = smov 0  }
   0xd LB: > { %s4013_s13 = sadd.s32 4294967295, %s3925_s12   ;;  %s4016_s14 = sadd.s32 1, %s3925_s12   ;;  %s3925_s12 = sphi %s4000_s12, %s4874_s12   ;;  %s3921_s11 = sphi %s3998_s11, %s4873_s11   ;;  %s3917_s10 = sphi %s3996_s10, %s4872_s10   ;;  %s3913_s30 = sphi %s3994_s30, %s4871_s30  }
   0xe   : > { %s33_s15 = ssub.s32 %s3925_s12, %s4016_s14  ;;  %s36_s16 = sadd.s32 1, %s3921_s11 }
   0xf   : > { %p34_p0 = scmp.eq.s32.totalorder %s33_s15, 0  ;;  %p43_p1 = scmp.ne.s32.totalorder %s3921_s11, %s3917_s10 }
  0x10   : > { %p44_p2 = scmp.eq.s32.totalorder %s3925_s12, 0  ;;  %p49_p3 = scmp.ne.s32.totalorder %s3917_s10, %s3913_s30 }
  0x11   : > { %s4026_s17 = scalar_select %p34_p0, %s3921_s11, %s36_s16  }
  0x12   : > { %p4028_p4 = por %p44_p2, %p43_p1  ;;  %p4848_p5 = scmp.eq.s32.totalorder %s4013_s13, 0 }
  0x13   : > { %p2830_p6 = scmp.ge.s32.totalorder %s3925_s12, 1  ;;  %p254_p7 = scmp.lt.s32.totalorder %s3925_s12, 3 }
  0x14   : > { %p4037_p8 = por %p4848_p5, %p49_p3  ;;  %s3927_s21 = smov [#allocation9]  }
  0x15   : > { %p4042_p10 = pnand %p2830_p6, %p254_p7  ;;  %s269_s22 = sshll.u32 %s3927_s21, 4  ;;  %s270_s22 = int_to_ptr.vmem [resolvable:$true] %s269_s22 }
  0x16   : > { %s4855_s19 = scalar_select %p4037_p8, 1, 0 }
  0x17   : > { %p3348_p11 = pneg %p4042_p10  ;;  %p3368_p13 = scmp.lt.s32.totalorder %s3925_s12, 2 }
  0x18   : > { %s3714_s25 = scalar_lea.vmem %s270_s22, 2048  ;;  %p3722_p7 = scmp.lt.s32.totalorder %s270_s22, %s270_s22 }
  0x19   : > { %p4050_p12 = pnand %p3348_p11, %p4848_p5  ;;  %p4057_p0 = pnand %p3368_p13, %p4028_p4 }
  0x1a   : > { %p3715_p2 = scmp.ne.s32.totalorder %s270_s22, %s3714_s25  ;;  %p3723_p11 = scmp.lt.s32.totalorder %s3714_s25, %s3714_s25 }
  0x1b   : > { %p3705_p1 = pneg %p4050_p12 }
  0x1c   : > { %p3724_p9 = por %p3723_p11, %p3722_p7 }
  0x1d   : > { %p3717_p3 = pnand %p3715_p2, %p3705_p1 }
  0x1f   : > { %p3718_p6 = pneg %p3717_p3 }
  0x21   : > { %p3725_p5 = pnand %p3724_p9, %p3718_p6 }
  0x23   : > { %3728 = shalt.err (!%p3725_p5)
}
  0x24   : > { %s3928_s26 = smov 128   ;;  %s3929_s27 = smov 8  }
  0x25   : > { %s4859_s3 = sld [smem:[#allocation22_spill]]  ;;  %s3930_s30 = smov [#allocation10]  }
  0x26   : > { %s285_s15 = sshll.u32 %s3930_s30, 4  ;;  %s3931_s16 = smov [#allocation12]   ;;  %s286_s15 = int_to_ptr.vmem [resolvable:$true] %s285_s15 }
  0x27   : > { %s301_s18 = sshll.u32 %s3931_s16, 4  ;;  %s3740_s21 = scalar_lea.vmem %s286_s15, 2048  ;;  %s302_s18 = int_to_ptr.vmem [resolvable:$true] %s301_s18 }
  0x28   : > { %p3741_p4 = scmp.ne.s32.totalorder %s286_s15, %s3740_s21  ;;  %p3748_p13 = scmp.lt.s32.totalorder %s286_s15, %s286_s15 }
  0x29   : > { %p3749_p2 = scmp.lt.s32.totalorder %s3740_s21, %s3740_s21 }
  0x2a   : > { %p3743_p5 = pnand %p3741_p4, %p3705_p1 }
  0x2b   : > { %3351 = dma.hbm_to_vmem [thread:$0]  (!%p4050_p12), %s4859_s3, 2048, %s270_s22, [#allocation8], %s3928_s26, %s3928_s26, %s3929_s27  }
  0x2c   : > { %p3744_p9 = pneg %p3743_p5  ;;  %p3750_p3 = por %p3749_p2, %p3748_p13 }
  0x2e   : > { %p3751_p6 = pnand %p3750_p3, %p3744_p9 }
  0x30   : > { %3754 = shalt.err (!%p3751_p6)
}
  0x31   : > { %s4860_s5 = sld [smem:[#allocation23_spill]]  ;;  %s315_s28 = sand.u32 1, %s3921_s11  }
  0x32   : > { %s3766_s29 = scalar_lea.vmem %s302_s18, 2048  ;;  %p3774_p5 = scmp.lt.s32.totalorder %s302_s18, %s302_s18 }
  0x33   : > { %p3767_p7 = scmp.ne.s32.totalorder %s302_s18, %s3766_s29  ;;  %p3775_p9 = scmp.lt.s32.totalorder %s3766_s29, %s3766_s29 }
  0x35   : > { %p3769_p11 = pnand %p3767_p7, %p3705_p1  ;;  %p3776_p13 = por %p3775_p9, %p3774_p5 }
  0x37   : > { %3354 = dma.hbm_to_vmem [thread:$0]  (!%p4050_p12), %s4860_s5, 2048, %s286_s15, [#allocation11], %s3928_s26, %s3928_s26, %s3929_s27  }
  0x38   : > { %p3770_p4 = pneg %p3769_p11 }
  0x3a   : > { %p3777_p2 = pnand %p3776_p13, %p3770_p4 }
  0x3c   : > { %3780 = shalt.err (!%p3777_p2)
}
  0x3d   : > { %s4861_s7 = sld [smem:[#allocation24_spill]]  ;;  %s4097_s16 = sshll.u32 %s315_s28, 8 }
  0x3e   : > { %s2922_s21 = sshll.u32 %s3925_s12, 8  ;;  %s4862_s0 = sld [smem:[#allocation21_spill]] }
  0x3f   : > { %s319_s23 = scalar_lea.vmem [#allocation3], %s4097_s16  ;;  %s4108_s30 = scalar_lea.sflag [#allocation4], %s315_s28 }
  0x40   : > { %s326_s3 = sshll.u32 %s319_s23, 4  ;;  %p3783_p1 = pneg %p4057_p0  ;;  %s4106_s3 = int_to_ptr.vmem [resolvable:$true] %s326_s3 }
  0x43   : > { %3357 = dma.hbm_to_vmem [thread:$0]  (!%p4050_p12), %s4861_s7, 2048, %s302_s18, [#allocation11], %s3928_s26, %s3928_s26, %s3929_s27  }
  0x44   : > { %s4103_s29 = scalar_lea.hbm %s4862_s0, %s2922_s21  ;;  %s3786_s18 = scalar_lea.hbm %s4862_s0, 8192 }
  0x45   : > { %s3781_s15 = scalar_lea.hbm %s4103_s29, 4096  ;;  %p3787_p7 = scmp.lt.s32.totalorder %s4103_s29, %s4862_s0 }
  0x46   : > { %p3782_p12 = scmp.ne.s32.totalorder %s4103_s29, %s3781_s15  ;;  %p3788_p11 = scmp.lt.s32.totalorder %s3786_s18, %s3781_s15 }
  0x48   : > { %p3784_p3 = pnand %p3783_p1, %p3782_p12  ;;  %p3789_p4 = por %p3788_p11, %p3787_p7 }
  0x4a   : > { %p3785_p6 = pneg %p3784_p3 }
  0x4c   : > { %p3790_p5 = pnand %p3789_p4, %p3785_p6 }
  0x4e   : > { %3793 = shalt.err (!%p3790_p5)
}
  0x4f   : > { %s3794_s28 = scalar_lea.vmem %s4106_s3, 4096  ;;  %s3932_s25 = smov [#allocation3]  }
  0x50   : > { %p3795_p9 = scmp.ne.s32.totalorder %s4106_s3, %s3794_s28  ;;  %s3799_s23 = sshll.u32 %s3932_s25, 4  ;;  %s3800_s23 = int_to_ptr.vmem [resolvable:$false] %s3799_s23 }
  0x51   : > { %s3801_s26 = scalar_lea.vmem %s3800_s23, 8192  ;;  %p3802_p12 = scmp.lt.s32.totalorder %s4106_s3, %s3800_s23 }
  0x52   : > { %p3797_p13 = pnand %p3795_p9, %p3783_p1  ;;  %p3803_p3 = scmp.lt.s32.totalorder %s3801_s26, %s3794_s28 }
  0x54   : > { %p3798_p2 = pneg %p3797_p13  ;;  %p3804_p8 = por %p3803_p3, %p3802_p12 }
  0x56   : > { %p3805_p7 = pnand %p3804_p8, %p3798_p2 }
  0x58   : > { %3808 = shalt.err (!%p3805_p7)
}
  0x59   : > { %s3933_s15 = smov 512   ;;  %s3934_s27 = smov 256  }
  0x5a   : > { %s3935_s18 = smov 16   ;;  %s336_s21 = sand.u32 1, %s3925_s12  }
  0x5b   : > { %3361 = dma.hbm_to_vmem [thread:$0]  (!%p4057_p0), %s4103_s29, 4096, %s4106_s3, %s4108_s30, %s3933_s15, %s3934_s27, %s3935_s18  }
  0x5c   : > { %s2923_s22 = sshll.u32 %s3925_s12, 12  ;;  %s340_s26 = scalar_lea.vmem [#allocation7], %s4097_s16 }
  0x5d   : > { %s4140_s23 = scalar_lea.hbm %s4839_s1, %s2923_s22  ;;  %s347_s0 = sshll.u32 %s340_s26, 4  ;;  %s4143_s0 = int_to_ptr.vmem [resolvable:$true] %s347_s0 }
  0x5e   : > { %s4145_s5 = scalar_lea.sflag [#allocation8], %s336_s21  ;;  %s3809_s7 = scalar_lea.hbm %s4140_s23, 4096 }
  0x5f   : > { %p3810_p8 = scmp.ne.s32.totalorder %s4140_s23, %s3809_s7  ;;  %s3814_s29 = scalar_lea.hbm %s4839_s1, 8192 }
  0x60   : > { %p3815_p4 = scmp.lt.s32.totalorder %s4140_s23, %s4839_s1  ;;  %p3816_p5 = scmp.lt.s32.totalorder %s3814_s29, %s3809_s7 }
  0x61   : > { %p3812_p6 = pnand %p3810_p8, %p3783_p1 }
  0x62   : > { %p3817_p9 = por %p3816_p5, %p3815_p4 }
  0x63   : > { %p3813_p11 = pneg %p3812_p6 }
  0x65   : > { %p3818_p13 = pnand %p3817_p9, %p3813_p11 }
  0x67   : > { %3821 = shalt.err (!%p3818_p13)
}
  0x68   : > { %s3822_s16 = scalar_lea.vmem %s4143_s0, 4096  ;;  %s3936_s27 = smov [#allocation7]  }
  0x69   : > { %p3823_p2 = scmp.ne.s32.totalorder %s4143_s0, %s3822_s16  ;;  %s3827_s18 = sshll.u32 %s3936_s27, 4  ;;  %s3828_s18 = int_to_ptr.vmem [resolvable:$false] %s3827_s18 }
  0x6a   : > { %s3829_s21 = scalar_lea.vmem %s3828_s18, 8192  ;;  %p3830_p7 = scmp.lt.s32.totalorder %s4143_s0, %s3828_s18 }
  0x6b   : > { %p3825_p12 = pnand %p3823_p2, %p3783_p1  ;;  %p3831_p8 = scmp.lt.s32.totalorder %s3829_s21, %s3822_s16 }
  0x6d   : > { %p3826_p3 = pneg %p3825_p12  ;;  %p3832_p6 = por %p3831_p8, %p3830_p7 }
  0x6f   : > { %p3833_p4 = pnand %p3832_p6, %p3826_p3 }
  0x71   : > { %3836 = shalt.err (!%p3833_p4)
}
  0x72   : > { %s3937_s7 = smov 64   ;;  %s3938_s22 = smov 4  }
  0x73   : > { %3364 = dma.hbm_to_vmem [thread:$0]  (!%p4057_p0), %s4140_s23, 4096, %s4143_s0, %s4145_s5, %s3937_s7, %s3937_s7, %s3938_s22  }
  0x74   : > { %359 = sbr.rel (%p4042_p10) target bundleno = 1883 (0x75b), region = 52  ;;  %s361_s25 = sand.u32 (!%p4042_p10), 1, %s3917_s10  }
  0x75   : > { %s2842_s28 = sshll.u32 (!%p4042_p10), %s361_s25, 8  ;;  %s362_s26 = scalar_lea.sflag (!%p4042_p10), [#allocation4], %s361_s25 }
  0x76   : > { %s4173_s3 = scalar_lea.vmem (!%p4042_p10), [#allocation3], %s2842_s28  ;;  %p4863_p1 = scmp.ne.s32.totalorder (!%p4042_p10), %s4855_s19, 0 }
  0x79   : > { %3888 = dma.done.wait (%p4863_p1), %s362_s26, 4096  }
  0x7a   : > { %3890 = vsyncadd (%p4863_p1), %s362_s26, 4294963200  ;;  %s370_s12 = sand.u32 1, %s4013_s13   ;;  %s4180_s0 = scalar_lea.vmem [#allocation7], %s2842_s28 }
  0x7b   : > { %s371_s24 = scalar_lea.sflag [#allocation8], %s370_s12 }
  0x7c   : > { %3892 = dma.done.wait (%p4863_p1), %s371_s24, 4096  }
  0x7d   : > { %3894 = vsyncadd (%p4863_p1), %s371_s24, 4294963200  ;;  %p4864_p10 = scmp.eq.s32.totalorder %s4013_s13, 0 }
  0x7f   : > { %3896 = dma.done.wait (%p4864_p10), [#allocation8], 2048   ;;  %p4865_p0 = pmov %p4864_p10 }
  0x81   : > { %3898 = vsyncadd (%p4865_p0), [#allocation8], 4294965248  ;;  %p4866_p11 = pmov %p4865_p0 }
  0x82   : > { %p4867_p5 = pmov %p4865_p0 }
  0x83   : > { %3900 = dma.done.wait (%p4866_p11), [#allocation11], 4096  }
  0x84   : > { %3902 = vsyncadd (%p4867_p5), [#allocation11], 4294963200  ;;  %p4868_p9 = scmp.ne.s32.totalorder %s4013_s13, 0 }
  0x86   : > { %427 = sbr.rel (%p4868_p9) target bundleno = 148 (0x94), region = 76 }
  0x8b   : > { %v3939_v0 = vmov 0.0  }
  0x8c   : > { %428 = vst [vmem:[#allocation2 + $0x30] sm:$0xff] %v3939_v0  ;;  %429 = vst [vmem:[#allocation2] sm:$0xff] %v3939_v0 }
  0x8d   : > { %430 = vst [vmem:[#allocation2 + $0x58] sm:$0xff] %v3939_v0  ;;  %431 = vst [vmem:[#allocation2 + $0x18] sm:$0xff] %v3939_v0 }
  0x8e   : > { %432 = vst [vmem:[#allocation2 + $0x50] sm:$0xff] %v3939_v0  ;;  %433 = vst [vmem:[#allocation2 + $0x68] sm:$0xff] %v3939_v0 }
  0x8f   : > { %434 = vst [vmem:[#allocation2 + $0x8] sm:$0xff] %v3939_v0  ;;  %435 = vst [vmem:[#allocation2 + $0x48] sm:$0xff] %v3939_v0 }
  0x90   : > { %436 = vst [vmem:[#allocation2 + $0x40] sm:$0xff] %v3939_v0  ;;  %437 = vst [vmem:[#allocation2 + $0x20] sm:$0xff] %v3939_v0 }
  0x91   : > { %438 = vst [vmem:[#allocation2 + $0x10] sm:$0xff] %v3939_v0  ;;  %439 = vst [vmem:[#allocation2 + $0x38] sm:$0xff] %v3939_v0 }
  0x92   : > { %440 = vst [vmem:[#allocation2 + $0x60] sm:$0xff] %v3939_v0  ;;  %441 = vst [vmem:[#allocation2 + $0x70] sm:$0xff] %v3939_v0 }
  0x93   : > { %442 = vst [vmem:[#allocation2 + $0x78] sm:$0xff] %v3939_v0  ;;  %443 = vst [vmem:[#allocation2 + $0x28] sm:$0xff] %v3939_v0 }
  0x94 PF: > { %v3423_v1 = vld [vmem:[%s4180_s0 + $0x78] sm:$0xff]   ;;  %v3427_v5 = vld [vmem:[%s4180_s0 + $0x70] sm:$0xff]   ;;  %v3431_v9 = vld [vmem:[%s4180_s0 + $0x68] sm:$0xff]   ;;  %p2912_p13 = scmp.ne.s32.totalorder %s4013_s13, 1 }
  0x95   : > { %v3424_v2 = vld [vmem:[%s4180_s0 + $0xf8] sm:$0xff]   ;;  %2924 = vmatprep.subr.bf16.mxu0 %v3423_v1  ;;  %v3428_v6 = vld [vmem:[%s4180_s0 + $0xf0] sm:$0xff]   ;;  %v3432_v10 = vld [vmem:[%s4180_s0 + $0xe8] sm:$0xff]  }
  0x96   : > { %v3425_v3 = vld [vmem:[%s4180_s0 + $0x38] sm:$0xff]   ;;  %2988 = vmatprep.subr.bf16.mxu1 %v3424_v2  ;;  %v3429_v7 = vld [vmem:[%s4180_s0 + $0x30] sm:$0xff]   ;;  %v3433_v11 = vld [vmem:[%s4180_s0 + $0x28] sm:$0xff]  }
  0x97   : > { %v3426_v4 = vld [vmem:[%s4180_s0 + $0xb8] sm:$0xff]   ;;  %2925 = vmatpush3.bf16.msra.mxu0 %v3425_v3  ;;  %v3430_v8 = vld [vmem:[%s4180_s0 + $0xb0] sm:$0xff]   ;;  %v3434_v12 = vld [vmem:[%s4180_s0 + $0xa8] sm:$0xff]  }
  0x98   : > { %2989 = vmatpush3.bf16.msra.mxu1 %v3426_v4  ;;  %2926 = vmatprep.subr.bf16.mxu0 %v3427_v5  ;;  %v3435_v13 = vld [vmem:[%s4180_s0 + $0x60] sm:$0xff]   ;;  %v3439_v17 = vld [vmem:[%s4180_s0 + $0x58] sm:$0xff]   ;;  %v3443_v21 = vld [vmem:[%s4180_s0 + $0x50] sm:$0xff]  }
  0x99   : > { %2990 = vmatprep.subr.bf16.mxu1 %v3428_v6  ;;  %v3436_v14 = vld [vmem:[%s4180_s0 + $0xe0] sm:$0xff]   ;;  %v3440_v18 = vld [vmem:[%s4180_s0 + $0xd8] sm:$0xff]   ;;  %v3444_v22 = vld [vmem:[%s4180_s0 + $0xd0] sm:$0xff]  }
  0x9a   : > { %v3437_v15 = vld [vmem:[%s4180_s0 + $0x20] sm:$0xff]   ;;  %v3441_v19 = vld [vmem:[%s4180_s0 + $0x18] sm:$0xff]   ;;  %v3445_v23 = vld [vmem:[%s4180_s0 + $0x10] sm:$0xff]  }
  0x9b   : > { %2927 = vmatpush3.bf16.msra.mxu0 %v3429_v7  ;;  %v3438_v16 = vld [vmem:[%s4180_s0 + $0xa0] sm:$0xff]   ;;  %v3442_v20 = vld [vmem:[%s4180_s0 + $0x98] sm:$0xff]   ;;  %v3446_v24 = vld [vmem:[%s4180_s0 + $0x90] sm:$0xff]  }
  0x9c   : > { %2991 = vmatpush3.bf16.msra.mxu1 %v3430_v8  ;;  %2928 = vmatprep.subr.bf16.mxu0 %v3431_v9  ;;  %v3447_v25 = vld [vmem:[%s4180_s0 + $0x48] sm:$0xff]   ;;  %v3451_v29 = vld [vmem:[%s4180_s0 + $0x40] sm:$0xff]   ;;  %v444_v8 = vld [vmem:[#allocation2 + $0x30] sm:$0xff] }
  0x9d   : > { %2992 = vmatprep.subr.bf16.mxu1 %v3432_v10  ;;  %v3448_v26 = vld [vmem:[%s4180_s0 + $0xc8] sm:$0xff]   ;;  %v3452_v30 = vld [vmem:[%s4180_s0 + $0xc0] sm:$0xff]  }
  0x9e   : > { %v3449_v27 = vld [vmem:[%s4180_s0 + $0x8] sm:$0xff]   ;;  %v3453_v31 = vld [vmem:[%s4180_s0] sm:$0xff]  }
  0x9f   : > { %2929 = vmatpush3.bf16.msra.mxu0 %v3433_v11  ;;  %v3450_v28 = vld [vmem:[%s4180_s0 + $0x88] sm:$0xff]   ;;  %v3454_v32 = vld [vmem:[%s4180_s0 + $0x80] sm:$0xff]  }
  0xa0   : > { %2993 = vmatpush3.bf16.msra.mxu1 %v3434_v12  ;;  %2930 = vmatprep.subr.bf16.mxu0 %v3435_v13  ;;  %v3455_v33 = vld [vmem:[%s4173_s3] ss:$16 sps:$4 sm:$0xff]   ;;  %v3457_v34 = vld [vmem:[%s4173_s3 + $0x4] ss:$16 sps:$4 sm:$0xff]   ;;  %v3458_v35 = vld [vmem:[%s4173_s3 + $0x8] ss:$16 sps:$4 sm:$0xff]  }
  0xa1   : > { %2994 = vmatprep.subr.bf16.mxu1 %v3436_v14  ;;  %v3460_v36 = vld [vmem:[%s4173_s3 + $0xc] ss:$16 sps:$4 sm:$0xff]   ;;  %940 = vmatprep.mubr.bf16.mxu0 %v3457_v34  ;;  %v3461_v37 = vld [vmem:[%s4173_s3 + $0x24] ss:$16 sps:$4 sm:$0xff]   ;;  %v3465_v39 = vld [vmem:[%s4173_s3 + $0x20] ss:$16 sps:$4 sm:$0xff]  }
  0xa2   : > { %1037 = vmatprep.mubr.bf16.mxu1 %v3460_v36  ;;  %v3463_v38 = vld [vmem:[%s4173_s3 + $0x2c] ss:$16 sps:$4 sm:$0xff]   ;;  %v3466_v40 = vld [vmem:[%s4173_s3 + $0x28] ss:$16 sps:$4 sm:$0xff]   ;;  %v3467_v41 = vld [vmem:[%s4173_s3 + $0x44] ss:$16 sps:$4 sm:$0xff]  }
  0xa3   : > { %2931 = vmatpush3.bf16.msra.mxu0 %v3437_v15  ;;  %v3469_v42 = vld [vmem:[%s4173_s3 + $0x4c] ss:$16 sps:$4 sm:$0xff]   ;;  %v3471_v43 = vld [vmem:[%s4173_s3 + $0x40] ss:$16 sps:$4 sm:$0xff]   ;;  %v3472_v44 = vld [vmem:[%s4173_s3 + $0x48] ss:$16 sps:$4 sm:$0xff]  }
  0xa4   : > { %2995 = vmatpush3.bf16.msra.mxu1 %v3438_v16  ;;  %2932 = vmatprep.subr.bf16.mxu0 %v3439_v17  ;;  %v3473_v45 = vld [vmem:[%s4173_s3 + $0x64] ss:$16 sps:$4 sm:$0xff]   ;;  %v3475_v46 = vld [vmem:[%s4173_s3 + $0x6c] ss:$16 sps:$4 sm:$0xff]   ;;  %v3477_v47 = vld [vmem:[%s4173_s3 + $0x60] ss:$16 sps:$4 sm:$0xff]  }
  0xa5   : > { %2996 = vmatprep.subr.bf16.mxu1 %v3440_v18  ;;  %v3478_v48 = vld [vmem:[%s4173_s3 + $0x68] ss:$16 sps:$4 sm:$0xff]   ;;  %v3479_v49 = vld [vmem:[%s4173_s3 + $0x84] ss:$16 sps:$4 sm:$0xff]   ;;  %v3481_v50 = vld [vmem:[%s4173_s3 + $0x8c] ss:$16 sps:$4 sm:$0xff]  }
  0xa6   : > { %v3483_v51 = vld [vmem:[%s4173_s3 + $0x80] ss:$16 sps:$4 sm:$0xff]   ;;  %v3484_v52 = vld [vmem:[%s4173_s3 + $0x88] ss:$16 sps:$4 sm:$0xff]   ;;  %v3485_v53 = vld [vmem:[%s4173_s3 + $0xa4] ss:$16 sps:$4 sm:$0xff]  }
  0xa7   : > { %2933 = vmatpush3.bf16.msra.mxu0 %v3441_v19  ;;  %v3487_v54 = vld [vmem:[%s4173_s3 + $0xac] ss:$16 sps:$4 sm:$0xff]   ;;  %v3489_v55 = vld [vmem:[%s4173_s3 + $0xa0] ss:$16 sps:$4 sm:$0xff]   ;;  %v3490_v56 = vld [vmem:[%s4173_s3 + $0xa8] ss:$16 sps:$4 sm:$0xff]  }
  0xa8   : > { %2997 = vmatpush3.bf16.msra.mxu1 %v3442_v20  ;;  %2934 = vmatprep.subr.bf16.mxu0 %v3443_v21  ;;  %v3491_v57 = vld [vmem:[%s4173_s3 + $0xc4] ss:$16 sps:$4 sm:$0xff]   ;;  %v3493_v58 = vld [vmem:[%s4173_s3 + $0xcc] ss:$16 sps:$4 sm:$0xff]   ;;  %v3495_v59 = vld [vmem:[%s4173_s3 + $0xc0] ss:$16 sps:$4 sm:$0xff]  }
  0xa9   : > { %2998 = vmatprep.subr.bf16.mxu1 %v3444_v22  ;;  %v3496_v60 = vld [vmem:[%s4173_s3 + $0xc8] ss:$16 sps:$4 sm:$0xff]   ;;  %v3497_v61 = vld [vmem:[%s4173_s3 + $0xe4] ss:$16 sps:$4 sm:$0xff]   ;;  %v3499_v62 = vld [vmem:[%s4173_s3 + $0xec] ss:$16 sps:$4 sm:$0xff]  }
  0xaa   : > { %v3501_v63 = vld [vmem:[%s4173_s3 + $0xe0] ss:$16 sps:$4 sm:$0xff]   ;;  %v3502_v0 = vld [vmem:[%s4173_s3 + $0xe8] ss:$16 sps:$4 sm:$0xff]  }
  0xab   : > { %2935 = vmatpush3.bf16.msra.mxu0 %v3445_v23  ;;  %v445_v17 = vld [vmem:[#allocation2] sm:$0xff] }
  0xac   : > { %2999 = vmatpush3.bf16.msra.mxu1 %v3446_v24  ;;  %2936 = vmatprep.subr.bf16.mxu0 %v3447_v25 }
  0xad   : > { %3000 = vmatprep.subr.bf16.mxu1 %v3448_v26  ;;  %v446_v26 = vld [vmem:[#allocation2 + $0x58] sm:$0xff] }
  0xaf   : > { %2937 = vmatpush3.bf16.msra.mxu0 %v3449_v27 }
  0xb0   : > { %3001 = vmatpush3.bf16.msra.mxu1 %v3450_v28  ;;  %2938 = vmatprep.subr.bf16.mxu0 %v3451_v29 }
  0xb1   : > { %3002 = vmatprep.subr.bf16.mxu1 %v3452_v30 }
  0xb3   : > { %2939 = vmatpush3.bf16.msra.mxu0 %v3453_v31 }
  0xb4   : > { %3003 = vmatpush3.bf16.msra.mxu1 %v3454_v32 }
  0xb6   : > { %941 = vmatmul.mubr.bf16.vlgmr.msra.gmra.mxu0 %v3455_v33 }
  0xb7   : > { %1038 = vmatmul.mubr.bf16.vlgmr.msra.gmra.mxu1 %v3458_v35  ;;  %948 = vmatprep.mubr.bf16.mxu0 %v3461_v37  ;;  %v447_v35 = vld [vmem:[#allocation2 + $0x18] sm:$0xff] }
  0xb8   : > { %1045 = vmatprep.mubr.bf16.mxu1 %v3463_v38 }
  0xbe   : > { %949 = vmatmul.mubr.bf16.gmra.mxu0 %v3465_v39 }
  0xbf   : > { %1046 = vmatmul.mubr.bf16.gmra.mxu1 %v3466_v40  ;;  %956 = vmatprep.mubr.bf16.mxu0 %v3467_v41 }
  0xc0   : > { %1053 = vmatprep.mubr.bf16.mxu1 %v3469_v42 }
  0xc6   : > { %957 = vmatmul.mubr.bf16.gmra.mxu0 %v3471_v43 }
  0xc7   : > { %1054 = vmatmul.mubr.bf16.gmra.mxu1 %v3472_v44  ;;  %964 = vmatprep.mubr.bf16.mxu0 %v3473_v45  ;;  %v448_v44 = vld [vmem:[#allocation2 + $0x50] sm:$0xff] }
  0xc8   : > { %1061 = vmatprep.mubr.bf16.mxu1 %v3475_v46 }
  0xce   : > { %965 = vmatmul.mubr.bf16.gmra.mxu0 %v3477_v47 }
  0xcf   : > { %1062 = vmatmul.mubr.bf16.gmra.mxu1 %v3478_v48  ;;  %972 = vmatprep.mubr.bf16.mxu0 %v3479_v49 }
  0xd0   : > { %1069 = vmatprep.mubr.bf16.mxu1 %v3481_v50 }
  0xd6   : > { %973 = vmatmul.mubr.bf16.gmra.mxu0 %v3483_v51 }
  0xd7   : > { %1070 = vmatmul.mubr.bf16.gmra.mxu1 %v3484_v52  ;;  %980 = vmatprep.mubr.bf16.mxu0 %v3485_v53  ;;  %v449_v53 = vld [vmem:[#allocation2 + $0x68] sm:$0xff] }
  0xd8   : > { %1077 = vmatprep.mubr.bf16.mxu1 %v3487_v54 }
  0xde   : > { %981 = vmatmul.mubr.bf16.gmra.mxu0 %v3489_v55 }
  0xdf   : > { %1078 = vmatmul.mubr.bf16.gmra.mxu1 %v3490_v56  ;;  %988 = vmatprep.mubr.bf16.mxu0 %v3491_v57 }
  0xe0   : > { %1085 = vmatprep.mubr.bf16.mxu1 %v3493_v58 }
  0xe6   : > { %989 = vmatmul.mubr.bf16.gmra.mxu0 %v3495_v59 }
  0xe7   : > { %1086 = vmatmul.mubr.bf16.gmra.mxu1 %v3496_v60  ;;  %996 = vmatprep.mubr.bf16.mxu0 %v3497_v61 }
  0xe8   : > { %1093 = vmatprep.mubr.bf16.mxu1 %v3499_v62  ;;  %v450_v62 = vld [vmem:[#allocation2 + $0x8] sm:$0xff] }
  0xee   : > { %997 = vmatmul.mubr.bf16.gmra.mxu0 %v3501_v63 }
  0xef   : > { %1094 = vmatmul.mubr.bf16.gmra.mxu1 %v3502_v0 }
 0x176   : > { %v2940_v1 = vpop.f32.mrf.mxu0 }
 0x177   : > { %v3004_v2 = vpop.f32.mrf.mxu1 }
 0x178   : > { %v2941_v3 = vpop.f32.mrf.mxu0 }
 0x179   : > { %v2942_v4 = vadd.f32 %v2941_v3, %v2940_v1  ;;  %v3005_v5 = vpop.f32.mrf.mxu1 }
 0x17a   : > { %v3006_v6 = vadd.f32 %v3005_v5, %v3004_v2  ;;  %v2943_v7 = vpop.f32.mrf.mxu0 }
 0x17b   : > { %v3007_v9 = vpop.f32.mrf.mxu1 }
 0x17c   : > { %v1040_v10 = vadd.f32 %v3006_v6, %v2942_v4  ;;  %v2944_v11 = vpop.f32.mrf.mxu0 }
 0x17d   : > { %v2945_v12 = vadd.f32 %v2944_v11, %v2943_v7  ;;  %v3008_v13 = vpop.f32.mrf.mxu1  ;;  %v451_v7 = vld [vmem:[#allocation2 + $0x48] sm:$0xff] }
 0x17e   : > { %v1102_v14 = vadd.f32 %v1040_v10, %v444_v8  ;;  %v3009_v15 = vadd.f32 %v3008_v13, %v3007_v9  ;;  %v2946_v16 = vpop.f32.mrf.mxu0 }
 0x17f   : > { %v3010_v18 = vpop.f32.mrf.mxu1 }
 0x180   : > { %1118 = vst [vmem:[#allocation2 + $0x30] sm:$0xff] %v1102_v14  ;;  %v1043_v19 = vadd.f32 %v3009_v15, %v2945_v12  ;;  %v2947_v20 = vpop.f32.mrf.mxu0 }
 0x181   : > { %v2948_v21 = vadd.f32 %v2947_v20, %v2946_v16  ;;  %v3011_v22 = vpop.f32.mrf.mxu1  ;;  %v452_v16 = vld [vmem:[#allocation2 + $0x40] sm:$0xff] }
 0x182   : > { %v1103_v23 = vadd.f32 %v1043_v19, %v445_v17  ;;  %v3012_v24 = vadd.f32 %v3011_v22, %v3010_v18  ;;  %v2949_v25 = vpop.f32.mrf.mxu0 }
 0x183   : > { %v3013_v27 = vpop.f32.mrf.mxu1 }
 0x184   : > { %1119 = vst [vmem:[#allocation2] sm:$0xff] %v1103_v23  ;;  %v1048_v28 = vadd.f32 %v3012_v24, %v2948_v21  ;;  %v2950_v29 = vpop.f32.mrf.mxu0 }
 0x185   : > { %v2951_v30 = vadd.f32 %v2950_v29, %v2949_v25  ;;  %v3014_v31 = vpop.f32.mrf.mxu1  ;;  %v453_v25 = vld [vmem:[#allocation2 + $0x20] sm:$0xff] }
 0x186   : > { %v1104_v32 = vadd.f32 %v1048_v28, %v446_v26  ;;  %v3015_v33 = vadd.f32 %v3014_v31, %v3013_v27  ;;  %v2952_v34 = vpop.f32.mrf.mxu0 }
 0x187   : > { %v3016_v36 = vpop.f32.mrf.mxu1 }
 0x188   : > { %1120 = vst [vmem:[#allocation2 + $0x58] sm:$0xff] %v1104_v32  ;;  %v1051_v37 = vadd.f32 %v3015_v33, %v2951_v30  ;;  %v2953_v38 = vpop.f32.mrf.mxu0 }
 0x189   : > { %v2954_v39 = vadd.f32 %v2953_v38, %v2952_v34  ;;  %v3017_v40 = vpop.f32.mrf.mxu1  ;;  %v454_v34 = vld [vmem:[#allocation2 + $0x10] sm:$0xff] }
 0x18a   : > { %v1105_v41 = vadd.f32 %v1051_v37, %v447_v35  ;;  %v3018_v42 = vadd.f32 %v3017_v40, %v3016_v36  ;;  %v2955_v43 = vpop.f32.mrf.mxu0 }
 0x18b   : > { %v3019_v45 = vpop.f32.mrf.mxu1 }
 0x18c   : > { %1121 = vst [vmem:[#allocation2 + $0x18] sm:$0xff] %v1105_v41  ;;  %v1056_v46 = vadd.f32 %v3018_v42, %v2954_v39  ;;  %v2956_v47 = vpop.f32.mrf.mxu0 }
 0x18d   : > { %v2957_v48 = vadd.f32 %v2956_v47, %v2955_v43  ;;  %v3020_v49 = vpop.f32.mrf.mxu1  ;;  %v455_v43 = vld [vmem:[#allocation2 + $0x38] sm:$0xff] }
 0x18e   : > { %v1106_v50 = vadd.f32 %v1056_v46, %v448_v44  ;;  %v3021_v51 = vadd.f32 %v3020_v49, %v3019_v45  ;;  %v2958_v52 = vpop.f32.mrf.mxu0 }
 0x18f   : > { %v3022_v54 = vpop.f32.mrf.mxu1 }
 0x190   : > { %1122 = vst [vmem:[#allocation2 + $0x50] sm:$0xff] %v1106_v50  ;;  %v1059_v55 = vadd.f32 %v3021_v51, %v2957_v48  ;;  %v2959_v56 = vpop.f32.mrf.mxu0 }
 0x191   : > { %v2960_v57 = vadd.f32 %v2959_v56, %v2958_v52  ;;  %v3023_v58 = vpop.f32.mrf.mxu1  ;;  %v456_v52 = vld [vmem:[#allocation2 + $0x60] sm:$0xff] }
 0x192   : > { %v1107_v59 = vadd.f32 %v1059_v55, %v449_v53  ;;  %v3024_v60 = vadd.f32 %v3023_v58, %v3022_v54  ;;  %v2961_v61 = vpop.f32.mrf.mxu0 }
 0x193   : > { %v3025_v63 = vpop.f32.mrf.mxu1 }
 0x194   : > { %1123 = vst [vmem:[#allocation2 + $0x68] sm:$0xff] %v1107_v59  ;;  %v1064_v0 = vadd.f32 %v3024_v60, %v2960_v57  ;;  %v2962_v1 = vpop.f32.mrf.mxu0 }
 0x195   : > { %v2963_v2 = vadd.f32 %v2962_v1, %v2961_v61  ;;  %v3026_v3 = vpop.f32.mrf.mxu1  ;;  %v457_v61 = vld [vmem:[#allocation2 + $0x70] sm:$0xff] }
 0x196   : > { %v1108_v4 = vadd.f32 %v1064_v0, %v450_v62  ;;  %v3027_v5 = vadd.f32 %v3026_v3, %v3025_v63  ;;  %v2964_v6 = vpop.f32.mrf.mxu0 }
 0x197   : > { %v3028_v8 = vpop.f32.mrf.mxu1 }
 0x198   : > { %1124 = vst [vmem:[#allocation2 + $0x8] sm:$0xff] %v1108_v4  ;;  %v1067_v9 = vadd.f32 %v3027_v5, %v2963_v2  ;;  %v2965_v10 = vpop.f32.mrf.mxu0 }
 0x199   : > { %v2966_v11 = vadd.f32 %v2965_v10, %v2964_v6  ;;  %v3029_v12 = vpop.f32.mrf.mxu1  ;;  %v458_v6 = vld [vmem:[#allocation2 + $0x78] sm:$0xff] }
 0x19a   : > { %v1109_v13 = vadd.f32 %v1067_v9, %v451_v7  ;;  %v3030_v14 = vadd.f32 %v3029_v12, %v3028_v8  ;;  %v2967_v15 = vpop.f32.mrf.mxu0 }
 0x19b   : > { %v3031_v17 = vpop.f32.mrf.mxu1 }
 0x19c   : > { %1125 = vst [vmem:[#allocation2 + $0x48] sm:$0xff] %v1109_v13  ;;  %v1072_v18 = vadd.f32 %v3030_v14, %v2966_v11  ;;  %v2968_v19 = vpop.f32.mrf.mxu0  ;;  %v459_v14 = vld [vmem:[#allocation2 + $0x28] sm:$0xff] }
 0x19d   : > { %v2969_v20 = vadd.f32 %v2968_v19, %v2967_v15  ;;  %v3032_v21 = vpop.f32.mrf.mxu1 }
 0x19e   : > { %v1110_v22 = vadd.f32 %v1072_v18, %v452_v16  ;;  %v3033_v23 = vadd.f32 %v3032_v21, %v3031_v17  ;;  %v2970_v24 = vpop.f32.mrf.mxu0 }
 0x19f   : > { %v3034_v26 = vpop.f32.mrf.mxu1 }
 0x1a0   : > { %1126 = vst [vmem:[#allocation2 + $0x40] sm:$0xff] %v1110_v22  ;;  %v1075_v27 = vadd.f32 %v3033_v23, %v2969_v20  ;;  %v2971_v28 = vpop.f32.mrf.mxu0 }
 0x1a1   : > { %v2972_v29 = vadd.f32 %v2971_v28, %v2970_v24  ;;  %v3035_v30 = vpop.f32.mrf.mxu1 }
 0x1a2   : > { %v1111_v31 = vadd.f32 %v1075_v27, %v453_v25  ;;  %v3036_v32 = vadd.f32 %v3035_v30, %v3034_v26  ;;  %v2973_v33 = vpop.f32.mrf.mxu0 }
 0x1a3   : > { %v3037_v35 = vpop.f32.mrf.mxu1 }
 0x1a4   : > { %1127 = vst [vmem:[#allocation2 + $0x20] sm:$0xff] %v1111_v31  ;;  %v1080_v36 = vadd.f32 %v3036_v32, %v2972_v29  ;;  %v2974_v37 = vpop.f32.mrf.mxu0 }
 0x1a5   : > { %v2975_v38 = vadd.f32 %v2974_v37, %v2973_v33  ;;  %v3038_v39 = vpop.f32.mrf.mxu1 }
 0x1a6   : > { %v1112_v40 = vadd.f32 %v1080_v36, %v454_v34  ;;  %v3039_v41 = vadd.f32 %v3038_v39, %v3037_v35  ;;  %v2976_v42 = vpop.f32.mrf.mxu0 }
 0x1a7   : > { %v3040_v44 = vpop.f32.mrf.mxu1 }
 0x1a8   : > { %1128 = vst [vmem:[#allocation2 + $0x10] sm:$0xff] %v1112_v40  ;;  %v1083_v45 = vadd.f32 %v3039_v41, %v2975_v38  ;;  %v2977_v46 = vpop.f32.mrf.mxu0 }
 0x1a9   : > { %v2978_v47 = vadd.f32 %v2977_v46, %v2976_v42  ;;  %v3041_v48 = vpop.f32.mrf.mxu1 }
 0x1aa   : > { %v1113_v49 = vadd.f32 %v1083_v45, %v455_v43  ;;  %v3042_v50 = vadd.f32 %v3041_v48, %v3040_v44  ;;  %v2979_v51 = vpop.f32.mrf.mxu0 }
 0x1ab   : > { %v3043_v53 = vpop.f32.mrf.mxu1 }
 0x1ac   : > { %1129 = vst [vmem:[#allocation2 + $0x38] sm:$0xff] %v1113_v49  ;;  %v1088_v54 = vadd.f32 %v3042_v50, %v2978_v47  ;;  %v2980_v55 = vpop.f32.mrf.mxu0 }
 0x1ad   : > { %v2981_v56 = vadd.f32 %v2980_v55, %v2979_v51  ;;  %v3044_v57 = vpop.f32.mrf.mxu1 }
 0x1ae   : > { %v1114_v58 = vadd.f32 %v1088_v54, %v456_v52  ;;  %v3045_v59 = vadd.f32 %v3044_v57, %v3043_v53  ;;  %v2982_v60 = vpop.f32.mrf.mxu0 }
 0x1af   : > { %v3046_v62 = vpop.f32.mrf.mxu1 }
 0x1b0   : > { %1130 = vst [vmem:[#allocation2 + $0x60] sm:$0xff] %v1114_v58  ;;  %v1091_v63 = vadd.f32 %v3045_v59, %v2981_v56  ;;  %v2983_v0 = vpop.f32.mrf.mxu0 }
 0x1b1   : > { %v2984_v1 = vadd.f32 %v2983_v0, %v2982_v60  ;;  %v3047_v2 = vpop.f32.mrf.mxu1 }
 0x1b2   : > { %v1115_v3 = vadd.f32 %v1091_v63, %v457_v61  ;;  %v3048_v4 = vadd.f32 %v3047_v2, %v3046_v62  ;;  %v2985_v5 = vpop.f32.mrf.mxu0 }
 0x1b3   : > { %v3049_v7 = vpop.f32.mrf.mxu1 }
 0x1b4   : > { %1131 = vst [vmem:[#allocation2 + $0x70] sm:$0xff] %v1115_v3  ;;  %v1096_v8 = vadd.f32 %v3048_v4, %v2984_v1  ;;  %v2986_v9 = vpop.f32.mrf.mxu0 }
 0x1b5   : > { %v2987_v10 = vadd.f32 %v2986_v9, %v2985_v5  ;;  %v3050_v11 = vpop.f32.mrf.mxu1 }
 0x1b6   : > { %v1116_v12 = vadd.f32 %v1096_v8, %v458_v6  ;;  %v3051_v13 = vadd.f32 %v3050_v11, %v3049_v7 }
 0x1b8   : > { %1132 = vst [vmem:[#allocation2 + $0x78] sm:$0xff] %v1116_v12  ;;  %v1099_v15 = vadd.f32 %v3051_v13, %v2987_v10  ;;  %1137 = sbr.rel (%p2912_p13) target bundleno = 1862 (0x746), region = 80 }
 0x1ba   : > { %v1117_v16 = vadd.f32 %v1099_v15, %v459_v14 }
 0x1bc   : > { %1133 = vst [vmem:[#allocation2 + $0x28] sm:$0xff] %v1117_v16 }
 0x1bd   : > { %v2913_v18 = vld [vmem:[%s4840_s2] ss:$0 sm:$0xff]  ;;  %v1151_v22 = vld [vmem:[#allocation2 + $0x70] sm:$0xff]  ;;  %v1149_v26 = vld [vmem:[#allocation2 + $0x38] sm:$0xff] }
 0x1be   : > { %v1150_v23 = vld [vmem:[#allocation2 + $0x60] sm:$0xff]  ;;  %v4268_v24 = vadd.f32 %v2913_v18, %v1151_v22  ;;  %v1148_v28 = vld [vmem:[#allocation2 + $0x10] sm:$0xff]  ;;  %v4278_v31 = vadd.f32 %v2913_v18, %v1149_v26  ;;  %v1145_v40 = vld [vmem:[#allocation2 + $0x48] sm:$0xff] }
 0x1bf   : > { %v1152_v19 = vld [vmem:[#allocation2 + $0x78] sm:$0xff]  ;;  %v4270_v25 = vadd.f32 %v2913_v18, %v1150_v23  ;;  %v4282_v33 = vadd.f32 %v2913_v18, %v1148_v28  ;;  %v1147_v34 = vld [vmem:[#allocation2 + $0x20] sm:$0xff]  ;;  %v1144_v41 = vld [vmem:[#allocation2 + $0x8] sm:$0xff]  ;;  %v4294_v43 = vadd.f32 %v2913_v18, %v1145_v40 }
 0x1c0   : > { %v4266_v21 = vadd.f32 %v2913_v18, %v1152_v19  ;;  %v1190_v29 = vmul.f32 %v4268_v24, %v4268_v24  ;;  %v1146_v35 = vld [vmem:[#allocation2 + $0x40] sm:$0xff]  ;;  %v1188_v36 = vmul.f32 %v4278_v31, %v4278_v31  ;;  %v4286_v37 = vadd.f32 %v2913_v18, %v1147_v34  ;;  %v1143_v46 = vld [vmem:[#allocation2 + $0x68] sm:$0xff]  ;;  %v1142_v47 = vld [vmem:[#allocation2 + $0x50] sm:$0xff] }
 0x1c1   : > { %v1189_v32 = vmul.f32 %v4270_v25, %v4270_v25  ;;  %v1187_v38 = vmul.f32 %v4282_v33, %v4282_v33  ;;  %v4290_v39 = vadd.f32 %v2913_v18, %v1146_v35  ;;  %v4298_v45 = vadd.f32 %v2913_v18, %v1144_v41  ;;  %v1141_v52 = vld [vmem:[#allocation2 + $0x18] sm:$0xff]  ;;  %v1139_v58 = vld [vmem:[#allocation2] sm:$0xff]  ;;  %v1138_v59 = vld [vmem:[#allocation2 + $0x30] sm:$0xff] }
 0x1c2   : > { %v1191_v30 = vmul.f32 %v4266_v21, %v4266_v21  ;;  %1219 = vadd.xlane.f32.xlu1 %v1190_v29  ;;  %v1186_v42 = vmul.f32 %v4286_v37, %v4286_v37  ;;  %v1184_v48 = vmul.f32 %v4294_v43, %v4294_v43  ;;  %v4302_v49 = vadd.f32 %v2913_v18, %v1143_v46  ;;  %v1140_v53 = vld [vmem:[#allocation2 + $0x58] sm:$0xff] }
 0x1c3   : > { %v1153_v17 = vld [vmem:[#allocation2 + $0x28] sm:$0xff]  ;;  %v1185_v44 = vmul.f32 %v4290_v39, %v4290_v39  ;;  %v1183_v50 = vmul.f32 %v4298_v45, %v4298_v45  ;;  %v4306_v51 = vadd.f32 %v2913_v18, %v1142_v47  ;;  %v4310_v55 = vadd.f32 %v2913_v18, %v1141_v52 }
 0x1c4   : > { %v4264_v20 = vadd.f32 %v2913_v18, %v1153_v17  ;;  %v1182_v54 = vmul.f32 %v4302_v49, %v4302_v49  ;;  %v4314_v57 = vadd.f32 %v2913_v18, %v1140_v53  ;;  %v4318_v61 = vadd.f32 %v2913_v18, %v1139_v58 }
 0x1c5   : > { %v1181_v56 = vmul.f32 %v4306_v51, %v4306_v51  ;;  %v1180_v60 = vmul.f32 %v4310_v55, %v4310_v55  ;;  %v4322_v63 = vadd.f32 %v2913_v18, %v1138_v59 }
 0x1c6   : > { %v1192_v27 = vmul.f32 %v4264_v20, %v4264_v20  ;;  %1217 = vadd.xlane.f32.xlu1 %v1189_v32  ;;  %v1179_v62 = vmul.f32 %v4314_v57, %v4314_v57  ;;  %v1178_v0 = vmul.f32 %v4318_v61, %v4318_v61 }
 0x1c7   : > { %v1177_v1 = vmul.f32 %v4322_v63, %v4322_v63 }
 0x1c8   : > { %1223 = vadd.xlane.f32.xlu0 %v1192_v27 }
 0x1ca   : > { %1213 = vadd.xlane.f32.xlu1 %v1187_v38 }
 0x1cc   : > { %1221 = vadd.xlane.f32.xlu0 %v1191_v30 }
 0x1ce   : > { %1209 = vadd.xlane.f32.xlu1 %v1185_v44 }
 0x1d0   : > { %1215 = vadd.xlane.f32.xlu0 %v1188_v36 }
 0x1d2   : > { %1205 = vadd.xlane.f32.xlu1 %v1183_v50 }
 0x1d4   : > { %1211 = vadd.xlane.f32.xlu0 %v1186_v42 }
 0x1d6   : > { %1201 = vadd.xlane.f32.xlu1 %v1181_v56 }
 0x1d8   : > { %1207 = vadd.xlane.f32.xlu0 %v1184_v48 }
 0x1da   : > { %1197 = vadd.xlane.f32.xlu1 %v1179_v62 }
 0x1dc   : > { %1203 = vadd.xlane.f32.xlu0 %v1182_v54 }
 0x1de   : > { %1193 = vadd.xlane.f32.xlu1 %v1177_v1 }
 0x1e0   : > { %1199 = vadd.xlane.f32.xlu0 %v1180_v60 }
 0x1e4   : > { %1195 = vadd.xlane.f32.xlu0 %v1178_v0 }
 0x24b   : > { %v1220_v4 = vpop.xlane.xlu1 %1219 }
 0x24c   : > { %v1238_v5 = vadd.f32 1e-24, %v1220_v4 }
 0x24f   : > { %v1218_v8 = vpop.xlane.xlu1 %1217 }
 0x250   : > { %v1237_v9 = vadd.f32 1e-24, %v1218_v8 }
 0x251   : > { %v1224_v2 = vpop.xlane.xlu0 %1223 }
 0x252   : > { %v1240_v3 = vadd.f32 1e-24, %v1224_v2 }
 0x253   : > { %v1214_v12 = vpop.xlane.xlu1 %1213 }
 0x254   : > { %3503 = vrsqrt.f32 %v1240_v3  ;;  %v1235_v13 = vadd.f32 1e-24, %v1214_v12 }
 0x255   : > { %v1222_v6 = vpop.xlane.xlu0 %1221  ;;  %3505 = vrsqrt.f32 %v1238_v5 }
 0x256   : > { %v1239_v7 = vadd.f32 1e-24, %v1222_v6 }
 0x257   : > { %v1210_v14 = vpop.xlane.xlu1 %1209 }
 0x258   : > { %3507 = vrsqrt.f32 %v1239_v7  ;;  %v1233_v28 = vadd.f32 1e-24, %v1210_v14  ;;  %v1840_v14 = vld [vmem:[#allocation9 + $0x70] sm:$0xff] }
 0x259   : > { %v1216_v10 = vpop.xlane.xlu0 %1215  ;;  %3509 = vrsqrt.f32 %v1237_v9 }
 0x25a   : > { %v1236_v11 = vadd.f32 1e-24, %v1216_v10 }
 0x25b   : > { %v1206_v19 = vpop.xlane.xlu1 %1205 }
 0x25c   : > { %3511 = vrsqrt.f32 %v1236_v11  ;;  %v1231_v36 = vadd.f32 1e-24, %v1206_v19 }
 0x25d   : > { %v1212_v15 = vpop.xlane.xlu0 %1211  ;;  %3513 = vrsqrt.f32 %v1235_v13  ;;  %v1841_v13 = vld [vmem:[#allocation9 + $0x78] sm:$0xff] }
 0x25e   : > { %v1234_v18 = vadd.f32 1e-24, %v1212_v15  ;;  %3204 = vmatprep.subr.mxu1 %v1841_v13  ;;  %v1839_v15 = vld [vmem:[#allocation9 + $0x68] sm:$0xff] }
 0x25f   : > { %v1202_v29 = vpop.xlane.xlu1 %1201  ;;  %3205 = vmatpush3.msra.mxu1 %v1841_v13  ;;  %v1827_v13 = vld [vmem:[#allocation9 + $0x8] sm:$0xff] }
 0x260   : > { %3515 = vrsqrt.f32 %v1234_v18  ;;  %v1229_v47 = vadd.f32 1e-24, %v1202_v29  ;;  %3206 = vmatprep.subr.mxu1 %v1840_v14 }
 0x261   : > { %v3504_v16 = vpop.eup %3503  ;;  %v1208_v30 = vpop.xlane.xlu0 %1207  ;;  %3517 = vrsqrt.f32 %v1233_v28  ;;  %3207 = vmatpush3.msra.mxu1 %v1840_v14  ;;  %v1826_v14 = vld [vmem:[#allocation9] sm:$0xff] }
 0x262   : > { %v4329_v17 = vmul.f32 %v3504_v16, %v4264_v20  ;;  %v3506_v22 = vpop.eup %3505  ;;  %v1838_v16 = vld [vmem:[#allocation9 + $0x60] sm:$0xff]  ;;  %3208 = vmatprep.subr.mxu1 %v1839_v15 }
 0x263   : > { %v4337_v27 = vmul.f32 %v3506_v22, %v4268_v24  ;;  %v1198_v34 = vpop.xlane.xlu1 %1197  ;;  %3209 = vmatpush3.msra.mxu1 %v1839_v15 }
 0x264   : > { %3148 = vmatprep.subr.mxu0 %v4329_v17  ;;  %v1227_v58 = vadd.f32 1e-24, %v1198_v34  ;;  %3210 = vmatprep.subr.mxu1 %v1838_v16 }
 0x265   : > { %v3508_v23 = vpop.eup %3507  ;;  %3149 = vmatpush3.xpose.msra.mxu0 %v4329_v17  ;;  %v1204_v41 = vpop.xlane.xlu0 %1203  ;;  %3211 = vmatpush3.msra.mxu1 %v1838_v16 }
 0x266   : > { %v4334_v26 = vmul.f32 %v3508_v23, %v4266_v21  ;;  %v3510_v20 = vpop.eup %3509  ;;  %v1232_v21 = vadd.f32 1e-24, %v1208_v30  ;;  %v1230_v44 = vadd.f32 1e-24, %v1204_v41 }
 0x267   : > { %v4343_v32 = vmul.f32 %v3510_v20, %v4270_v25  ;;  %v1194_v38 = vpop.xlane.xlu1 %1193 }
 0x268   : > { %3150 = vmatprep.subr.mxu0 %v4334_v26  ;;  %3519 = vrsqrt.f32 %v1232_v21  ;;  %v1225_v42 = vadd.f32 1e-24, %v1194_v38 }
 0x269   : > { %3151 = vmatpush3.xpose.msra.mxu0 %v4334_v26  ;;  %v3512_v35 = vpop.eup %3511  ;;  %v1200_v50 = vpop.xlane.xlu0 %1199 }
 0x26a   : > { %3152 = vmatprep.subr.mxu0 %v4337_v27  ;;  %v4348_v24 = vmul.f32 %v3512_v35, %v4278_v31  ;;  %v3514_v40 = vpop.eup %3513  ;;  %3521 = vrsqrt.f32 %v1225_v42 }
 0x26b   : > { %3523 = vrsqrt.f32 %v1231_v36  ;;  %v4353_v25 = vmul.f32 %v3514_v40, %v4282_v33  ;;  %v1228_v33 = vadd.f32 1e-24, %v1200_v50 }
 0x26c   : > { %3525 = vrsqrt.f32 %v1230_v44 }
 0x26d   : > { %3153 = vmatpush3.xpose.msra.mxu0 %v4337_v27  ;;  %v3516_v46 = vpop.eup %3515  ;;  %3527 = vrsqrt.f32 %v1229_v47 }
 0x26e   : > { %3154 = vmatprep.subr.mxu0 %v4343_v32  ;;  %v1266_v31 = vmul.f32 %v3516_v46, %v4286_v37  ;;  %v3518_v48 = vpop.eup %3517  ;;  %3529 = vrsqrt.f32 %v1228_v33  ;;  %v1196_v37 = vpop.xlane.xlu0 %1195  ;;  %v1836_v33 = vld [vmem:[#allocation9 + $0x50] sm:$0xff] }
 0x26f   : > { %v1265_v52 = vmul.f32 %v3518_v48, %v4290_v39  ;;  %3531 = vrsqrt.f32 %v1227_v58  ;;  %v1226_v39 = vadd.f32 1e-24, %v1196_v37  ;;  %v1834_v37 = vld [vmem:[#allocation9 + $0x40] sm:$0xff] }
 0x271   : > { %3155 = vmatpush3.xpose.msra.mxu0 %v4343_v32  ;;  %3533 = vrsqrt.f32 %v1226_v39  ;;  %v1833_v39 = vld [vmem:[#allocation9 + $0x38] sm:$0xff] }
 0x272   : > { %3156 = vmatprep.subr.mxu0 %v4348_v24 }
 0x275   : > { %3157 = vmatpush3.xpose.msra.mxu0 %v4348_v24  ;;  %v3520_v53 = vpop.eup %3519 }
 0x276   : > { %3158 = vmatprep.subr.mxu0 %v4353_v25  ;;  %v1264_v56 = vmul.f32 %v3520_v53, %v4294_v43 }
 0x277   : > { %v3522_v54 = vpop.eup %3521 }
 0x278   : > { %v3524_v59 = vpop.eup %3523  ;;  %v1257_v60 = vmul.f32 %v3522_v54, %v4322_v63 }
 0x279   : > { %3159 = vmatpush3.xpose.msra.mxu0 %v4353_v25  ;;  %v1263_v62 = vmul.f32 %v3524_v59, %v4298_v45  ;;  %v3526_v0 = vpop.eup %3525 }
 0x27a   : > { %3160 = vmatprep.subr.mxu0 %v1266_v31  ;;  %3180 = vmatprep.mubr.f32.mxu0 %v1257_v60  ;;  %v1262_v1 = vmul.f32 %v3526_v0, %v4302_v49  ;;  %v3528_v2 = vpop.eup %3527 }
 0x27b   : > { %v1261_v43 = vmul.f32 %v3528_v2, %v4306_v51  ;;  %v3530_v3 = vpop.eup %3529  ;;  %v1418_v51 = vlaneseq  ;;  %v1832_v2 = vld [vmem:[#allocation9 + $0x30] sm:$0xff] }
 0x27c   : > { %v1260_v63 = vmul.f32 %v3530_v3, %v4310_v55  ;;  %v3532_v4 = vpop.eup %3531 }
 0x27d   : > { %3161 = vmatpush3.xpose.msra.mxu0 %v1266_v31  ;;  %v1259_v45 = vmul.f32 %v3532_v4, %v4314_v57  ;;  %v4374_v55 = vand.u32 127, %v1418_v51 }
 0x27e   : > { %3162 = vmatprep.subr.mxu0 %v1265_v52  ;;  %v3534_v5 = vpop.eup %3533 }
 0x27f   : > { %v1258_v49 = vmul.f32 %v3534_v5, %v4318_v61  ;;  %vm1631_vm0 = vcmp.ge.s32.totalorder %v4374_v55, 4  ;;  %vm1632_vm1 = vcmp.lt.s32.totalorder %v4374_v55, 8  ;;  %vm1421_vm3 = vcmp.lt.s32.totalorder %v4374_v55, 4  ;;  %v1830_v5 = vld [vmem:[#allocation9 + $0x20] sm:$0xff] }
 0x280   : > { %vm4380_vm2 = vmand %vm1631_vm0, %vm1632_vm1 }
 0x281   : > { %3163 = vmatpush3.xpose.msra.mxu0 %v1265_v52 }
 0x282   : > { %3164 = vmatprep.subr.mxu0 %v1264_v56 }
 0x285   : > { %3165 = vmatpush3.xpose.msra.mxu0 %v1264_v56 }
 0x286   : > { %3166 = vmatprep.subr.mxu0 %v1263_v62 }
 0x289   : > { %3167 = vmatpush3.xpose.msra.mxu0 %v1263_v62 }
 0x28a   : > { %3168 = vmatprep.subr.mxu0 %v1262_v1 }
 0x28d   : > { %3169 = vmatpush3.xpose.msra.mxu0 %v1262_v1 }
 0x28e   : > { %3170 = vmatprep.subr.mxu0 %v1261_v43 }
 0x291   : > { %3171 = vmatpush3.xpose.msra.mxu0 %v1261_v43 }
 0x292   : > { %3172 = vmatprep.subr.mxu0 %v1260_v63 }
 0x295   : > { %3173 = vmatpush3.xpose.msra.mxu0 %v1260_v63 }
 0x296   : > { %3174 = vmatprep.subr.mxu0 %v1259_v45 }
 0x299   : > { %3175 = vmatpush3.xpose.msra.mxu0 %v1259_v45 }
 0x29a   : > { %3176 = vmatprep.subr.mxu0 %v1258_v49 }
 0x29d   : > { %3177 = vmatpush3.xpose.msra.mxu0 %v1258_v49 }
 0x29e   : > { %3178 = vmatprep.subr.mxu0 %v1257_v60 }
 0x2a1   : > { %3179 = vmatpush3.xpose.msra.mxu0 %v1257_v60 }
 0x2a4   : > { %3181 = vmatmul.mubr.f32.vlgmr.msra.gmra.mxu0 %v1258_v49 }
 0x2a5   : > { %3183 = vmatprep.mubr.f32.mxu0 %v1259_v45  ;;  %v1831_v45 = vld [vmem:[#allocation9 + $0x28] sm:$0xff] }
 0x2a8   : > { %3184 = vmatmul.mubr.f32.gmra.mxu0 %v1260_v63 }
 0x2a9   : > { %3186 = vmatprep.mubr.f32.mxu0 %v1261_v43 }
 0x2ac   : > { %3187 = vmatmul.mubr.f32.gmra.mxu0 %v1262_v1 }
 0x2ad   : > { %3189 = vmatprep.mubr.f32.mxu0 %v1263_v62 }
 0x2b0   : > { %3190 = vmatmul.mubr.f32.gmra.mxu0 %v1264_v56  ;;  %v1835_v56 = vld [vmem:[#allocation9 + $0x48] sm:$0xff] }
 0x2b1   : > { %3192 = vmatprep.mubr.f32.mxu0 %v1265_v52 }
 0x2b4   : > { %3193 = vmatmul.mubr.f32.gmra.mxu0 %v1266_v31 }
 0x2b5   : > { %3195 = vmatprep.mubr.f32.mxu0 %v4353_v25 }
 0x2b8   : > { %3196 = vmatmul.mubr.f32.gmra.mxu0 %v4348_v24 }
 0x2b9   : > { %3198 = vmatprep.mubr.f32.mxu0 %v4343_v32 }
 0x2bc   : > { %3199 = vmatmul.mubr.f32.gmra.mxu0 %v4337_v27 }
 0x2bd   : > { %3201 = vmatprep.mubr.f32.mxu0 %v4334_v26 }
 0x2c0   : > { %3202 = vmatmul.mubr.f32.gmra.mxu0 %v4329_v17  ;;  %v1837_v17 = vld [vmem:[#allocation9 + $0x58] sm:$0xff] }
 0x2c1   : > { %3212 = vmatprep.subr.mxu1 %v1837_v17 }
 0x2c2   : > { %3213 = vmatpush3.msra.mxu1 %v1837_v17 }
 0x2c3   : > { %3214 = vmatprep.subr.mxu1 %v1836_v33 }
 0x2c4   : > { %3215 = vmatpush3.msra.mxu1 %v1836_v33 }
 0x2c5   : > { %3216 = vmatprep.subr.mxu1 %v1835_v56 }
 0x2c6   : > { %3217 = vmatpush3.msra.mxu1 %v1835_v56 }
 0x2c7   : > { %3218 = vmatprep.subr.mxu1 %v1834_v37 }
 0x2c8   : > { %3219 = vmatpush3.msra.mxu1 %v1834_v37 }
 0x2c9   : > { %3220 = vmatprep.subr.mxu1 %v1833_v39 }
 0x2ca   : > { %3221 = vmatpush3.msra.mxu1 %v1833_v39 }
 0x2cb   : > { %3222 = vmatprep.subr.mxu1 %v1832_v2 }
 0x2cc   : > { %3223 = vmatpush3.msra.mxu1 %v1832_v2 }
 0x2cd   : > { %3224 = vmatprep.subr.mxu1 %v1831_v45 }
 0x2ce   : > { %3225 = vmatpush3.msra.mxu1 %v1831_v45 }
 0x2cf   : > { %3226 = vmatprep.subr.mxu1 %v1830_v5 }
 0x2d0   : > { %3227 = vmatpush3.msra.mxu1 %v1830_v5 }
 0x364   : > { %v3182_v57 = vpop.f32.mrf.mxu0 }
 0x365   : > { %v1424_v8 = vmul.f32 35.83519, %v3182_v57 }
 0x366   : > { %v1339_v61 = vpop.f32.mrf.mxu0 }
 0x367   : > { %v1423_v6 = vmul.f32 35.83519, %v1339_v61  ;;  %v1635_v11 = vsel %vm4380_vm2, %v1424_v8, -1e+30  ;;  %v1440_v12 = vsel %vm1421_vm3, %v1424_v8, -1e+30 }
 0x368   : > { %v3185_v34 = vpop.f32.mrf.mxu0  ;;  %v1828_v8 = vld [vmem:[#allocation9 + $0x10] sm:$0xff] }
 0x369   : > { %v1634_v9 = vsel %vm4380_vm2, %v1423_v6, -1e+30  ;;  %v1439_v10 = vsel %vm1421_vm3, %v1423_v6, -1e+30  ;;  %v1426_v47 = vmul.f32 35.83519, %v3185_v34 }
 0x36a   : > { %1650 = vmax.xlane.f32.xlu1 %v1634_v9  ;;  %1455 = vmax.xlane.f32.xlu0 %v1439_v10  ;;  %v1349_v38 = vpop.f32.mrf.mxu0  ;;  %v1829_v6 = vld [vmem:[#allocation9 + $0x18] sm:$0xff] }
 0x36b   : > { %v1425_v25 = vmul.f32 35.83519, %v1349_v38  ;;  %v4425_v54 = vsel %vm4380_vm2, %v1426_v47, -1e+30  ;;  %v4430_v59 = vsel %vm1421_vm3, %v1426_v47, -1e+30  ;;  %3228 = vmatprep.subr.mxu1 %v1829_v6 }
 0x36c   : > { %v3188_v46 = vpop.f32.mrf.mxu0  ;;  %3229 = vmatpush3.msra.mxu1 %v1829_v6 }
 0x36d   : > { %v4415_v48 = vsel %vm4380_vm2, %v1425_v25, -1e+30  ;;  %v4420_v52 = vsel %vm1421_vm3, %v1425_v25, -1e+30  ;;  %v1428_v60 = vmul.f32 35.83519, %v3188_v46  ;;  %3230 = vmatprep.subr.mxu1 %v1828_v8 }
 0x36e   : > { %1652 = vmax.xlane.f32.xlu1 %v1635_v11  ;;  %1457 = vmax.xlane.f32.xlu0 %v1440_v12  ;;  %v1359_v50 = vpop.f32.mrf.mxu0 }
 0x36f   : > { %v1427_v53 = vmul.f32 35.83519, %v1359_v50  ;;  %v4445_v3 = vsel %vm4380_vm2, %v1428_v60, -1e+30  ;;  %v4450_v4 = vsel %vm1421_vm3, %v1428_v60, -1e+30  ;;  %3231 = vmatpush3.msra.mxu1 %v1828_v8 }
 0x370   : > { %v3191_v58 = vpop.f32.mrf.mxu0  ;;  %3232 = vmatprep.subr.mxu1 %v1827_v13 }
 0x371   : > { %v4435_v62 = vsel %vm4380_vm2, %v1427_v53, -1e+30  ;;  %v4440_v1 = vsel %vm1421_vm3, %v1427_v53, -1e+30  ;;  %v1430_v49 = vmul.f32 35.83519, %v3191_v58  ;;  %3233 = vmatpush3.msra.mxu1 %v1827_v13 }
 0x372   : > { %v1369_v0 = vpop.f32.mrf.mxu0  ;;  %3234 = vmatprep.subr.mxu1 %v1826_v14 }
 0x373   : > { %v1429_v43 = vmul.f32 35.83519, %v1369_v0  ;;  %3235 = vmatpush3.msra.mxu1 %v1826_v14 }
 0x374   : > { %v3194_v63 = vpop.f32.mrf.mxu0 }
 0x375   : > { %v4455_v51 = vsel %vm4380_vm2, %v1429_v43, -1e+30  ;;  %v4460_v61 = vsel %vm1421_vm3, %v1429_v43, -1e+30  ;;  %v1432_v15 = vmul.f32 35.83519, %v3194_v63 }
 0x376   : > { %v1379_v57 = vpop.f32.mrf.mxu0 }
 0x3f3   : > { %v1651_v18 = vpop.xlane.xlu1 %1650  ;;  %v1456_v19 = vpop.xlane.xlu0 %1455 }
 0x3f4   : > { %v1682_v22 = vsub.f32 %v1634_v9, %v1651_v18  ;;  %v1487_v23 = vsub.f32 %v1439_v10, %v1456_v19  ;;  %v1431_v9 = vmul.f32 35.83519, %v1379_v57  ;;  %v4465_v10 = vsel %vm4380_vm2, %v1430_v49, -1e+30 }
 0x3f6   : > { %v1698_v26 = vmul.f32 1.442695, %v1682_v22  ;;  %v1503_v27 = vmul.f32 1.442695, %v1487_v23  ;;  %v4475_v16 = vsel %vm4380_vm2, %v1431_v9, -1e+30 }
 0x3f7   : > { %v1653_v28 = vpop.xlane.xlu1 %1652  ;;  %v1458_v29 = vpop.xlane.xlu0 %1457  ;;  %v4480_v18 = vsel %vm1421_vm3, %v1431_v9, -1e+30  ;;  %v4485_v22 = vsel %vm4380_vm2, %v1432_v15, -1e+30 }
 0x3f8   : > { %3535 = vpow2.f32 %v1698_v26  ;;  %v1683_v20 = vsub.f32 %v1635_v11, %v1653_v28  ;;  %v1488_v30 = vsub.f32 %v1440_v12, %v1458_v29  ;;  %v3197_v11 = vpop.f32.mrf.mxu0  ;;  %v4470_v12 = vsel %vm1421_vm3, %v1430_v49, -1e+30 }
 0x3f9   : > { %3537 = vpow2.f32 %v1503_v27  ;;  %v4490_v26 = vsel %vm1421_vm3, %v1432_v15, -1e+30  ;;  %v1434_v27 = vmul.f32 35.83519, %v3197_v11 }
 0x3fa   : > { %v1700_v32 = vmul.f32 1.442695, %v1683_v20  ;;  %v1505_v21 = vmul.f32 1.442695, %v1488_v30  ;;  %v1389_v17 = vpop.f32.mrf.mxu0 }
 0x3fb   : > { %v1433_v19 = vmul.f32 35.83519, %v1389_v17  ;;  %v4510_v34 = vsel %vm1421_vm3, %v1434_v27, -1e+30 }
 0x3fc   : > { %3539 = vpow2.f32 %v1700_v32  ;;  %v3200_v23 = vpop.f32.mrf.mxu0  ;;  %v4505_v32 = vsel %vm4380_vm2, %v1434_v27, -1e+30 }
 0x3fd   : > { %3541 = vpow2.f32 %v1505_v21  ;;  %v4495_v28 = vsel %vm4380_vm2, %v1433_v19, -1e+30  ;;  %v4500_v20 = vsel %vm1421_vm3, %v1433_v19, -1e+30 }
 0x3fe   : > { %v1399_v29 = vpop.f32.mrf.mxu0 }
 0x3ff   : > { %v1435_v30 = vmul.f32 35.83519, %v1399_v29 }
 0x400   : > { %v3203_v21 = vpop.f32.mrf.mxu0 }
 0x401   : > { %v1438_v47 = vmul.f32 35.83519, %v3203_v21 }
 0x402   : > { %v1409_v38 = vpop.f32.mrf.mxu0 }
 0x403   : > { %v4545_v53 = vsel %vm4380_vm2, %v1438_v47, -1e+30  ;;  %v4550_v56 = vsel %vm1421_vm3, %v1438_v47, -1e+30 }
 0x405   : > { %v3536_v35 = vpop.eup %3535 }
 0x406   : > { %v3538_v24 = vpop.eup %3537  ;;  %v4395_v36 = vsel %vm4380_vm2, %v3536_v35, 0.0  ;;  %v1436_v35 = vmul.f32 35.83519, %v3200_v23 }
 0x407   : > { %1746 = vadd.xlane.f32.xlu1 %v4395_v36  ;;  %v4400_v40 = vsel %vm1421_vm3, %v3538_v24, 0.0  ;;  %v4515_v24 = vsel %vm4380_vm2, %v1435_v30, -1e+30 }
 0x408   : > { %1551 = vadd.xlane.f32.xlu0 %v4400_v40  ;;  %v4525_v25 = vsel %vm4380_vm2, %v1436_v35, -1e+30  ;;  %v4530_v46 = vsel %vm1421_vm3, %v1436_v35, -1e+30 }
 0x409   : > { %v3540_v41 = vpop.eup %3539 }
 0x40a   : > { %v3542_v42 = vpop.eup %3541  ;;  %v4405_v44 = vsel %vm4380_vm2, %v3540_v41, 0.0  ;;  %v4520_v41 = vsel %vm1421_vm3, %v1435_v30, -1e+30 }
 0x40b   : > { %1748 = vadd.xlane.f32.xlu1 %v4405_v44  ;;  %v4410_v31 = vsel %vm1421_vm3, %v3542_v42, 0.0  ;;  %v1437_v42 = vmul.f32 35.83519, %v1409_v38 }
 0x40c   : > { %1553 = vadd.xlane.f32.xlu0 %v4410_v31 }
 0x40d   : > { %v4535_v50 = vsel %vm4380_vm2, %v1437_v42, -1e+30  ;;  %v4540_v33 = vsel %vm1421_vm3, %v1437_v42, -1e+30 }
 0x40f   : > { %1654 = vmax.xlane.f32.xlu1 %v4415_v48 }
 0x410   : > { %1459 = vmax.xlane.f32.xlu0 %v4420_v52 }
 0x413   : > { %1656 = vmax.xlane.f32.xlu1 %v4425_v54 }
 0x414   : > { %1461 = vmax.xlane.f32.xlu0 %v4430_v59 }
 0x417   : > { %1658 = vmax.xlane.f32.xlu1 %v4435_v62 }
 0x418   : > { %1463 = vmax.xlane.f32.xlu0 %v4440_v1 }
 0x41b   : > { %1660 = vmax.xlane.f32.xlu1 %v4445_v3 }
 0x41c   : > { %1465 = vmax.xlane.f32.xlu0 %v4450_v4 }
 0x41f   : > { %1662 = vmax.xlane.f32.xlu1 %v4455_v51 }
 0x420   : > { %1467 = vmax.xlane.f32.xlu0 %v4460_v61 }
 0x423   : > { %1664 = vmax.xlane.f32.xlu1 %v4465_v10 }
 0x424   : > { %1469 = vmax.xlane.f32.xlu0 %v4470_v12 }
 0x427   : > { %1666 = vmax.xlane.f32.xlu1 %v4475_v16 }
 0x428   : > { %1471 = vmax.xlane.f32.xlu0 %v4480_v18 }
 0x42b   : > { %1668 = vmax.xlane.f32.xlu1 %v4485_v22 }
 0x42c   : > { %1473 = vmax.xlane.f32.xlu0 %v4490_v26 }
 0x42f   : > { %1670 = vmax.xlane.f32.xlu1 %v4495_v28 }
 0x430   : > { %1475 = vmax.xlane.f32.xlu0 %v4500_v20 }
 0x433   : > { %1672 = vmax.xlane.f32.xlu1 %v4505_v32 }
 0x434   : > { %1477 = vmax.xlane.f32.xlu0 %v4510_v34 }
 0x437   : > { %1674 = vmax.xlane.f32.xlu1 %v4515_v24 }
 0x438   : > { %1479 = vmax.xlane.f32.xlu0 %v4520_v41 }
 0x43b   : > { %1676 = vmax.xlane.f32.xlu1 %v4525_v25 }
 0x43c   : > { %1481 = vmax.xlane.f32.xlu0 %v4530_v46 }
 0x43f   : > { %1678 = vmax.xlane.f32.xlu1 %v4535_v50 }
 0x440   : > { %1483 = vmax.xlane.f32.xlu0 %v4540_v33 }
 0x443   : > { %1680 = vmax.xlane.f32.xlu1 %v4545_v53 }
 0x444   : > { %1485 = vmax.xlane.f32.xlu0 %v4550_v56 }
 0x490   : > { %v1747_v58 = vpop.xlane.xlu1 %1746 }
 0x491   : > { %3543 = vrcp.f32 %v1747_v58  ;;  %v1552_v37 = vpop.xlane.xlu0 %1551 }
 0x492   : > { %3545 = vrcp.f32 %v1552_v37 }
 0x494   : > { %v1749_v60 = vpop.xlane.xlu1 %1748 }
 0x495   : > { %3547 = vrcp.f32 %v1749_v60  ;;  %v1554_v39 = vpop.xlane.xlu0 %1553 }
 0x496   : > { %3549 = vrcp.f32 %v1554_v39 }
 0x498   : > { %v1655_v0 = vpop.xlane.xlu1 %1654 }
 0x499   : > { %v1460_v2 = vpop.xlane.xlu0 %1459  ;;  %v1684_v43 = vsub.f32 %v4415_v48, %v1655_v0 }
 0x49a   : > { %v1489_v63 = vsub.f32 %v4420_v52, %v1460_v2 }
 0x49b   : > { %v1702_v9 = vmul.f32 1.442695, %v1684_v43 }
 0x49c   : > { %v1657_v45 = vpop.xlane.xlu1 %1656  ;;  %v1507_v14 = vmul.f32 1.442695, %v1489_v63 }
 0x49d   : > { %v1685_v5 = vsub.f32 %v4425_v54, %v1657_v45  ;;  %v1462_v49 = vpop.xlane.xlu0 %1461 }
 0x49e   : > { %v3544_v57 = vpop.eup %3543  ;;  %v1490_v6 = vsub.f32 %v4430_v59, %v1462_v49 }
 0x49f   : > { %v3546_v8 = vpop.eup %3545  ;;  %v1704_v11 = vmul.f32 1.442695, %v1685_v5  ;;  %v1794_v13 = vmul.f32 %v3544_v57, %v4395_v36 }
 0x4a0   : > { %v1509_v15 = vmul.f32 1.442695, %v1490_v6  ;;  %v1659_v17 = vpop.xlane.xlu1 %1658  ;;  %v1599_v19 = vmul.f32 %v3546_v8, %v4400_v40 }
 0x4a1   : > { %3551 = vpow2.f32 %v1704_v11  ;;  %v1464_v48 = vpop.xlane.xlu0 %1463  ;;  %v1686_v27 = vsub.f32 %v4435_v62, %v1659_v17 }
 0x4a2   : > { %v3548_v52 = vpop.eup %3547  ;;  %3553 = vpow2.f32 %v1509_v15  ;;  %v1810_v23 = vadd.f32 %v1794_v13, %v1599_v19  ;;  %v1491_v29 = vsub.f32 %v4440_v1, %v1464_v48 }
 0x4a3   : > { %v3550_v54 = vpop.eup %3549  ;;  %3555 = vpow2.f32 %v1702_v9  ;;  %v1795_v59 = vmul.f32 %v3548_v52, %v4405_v44  ;;  %v1706_v42 = vmul.f32 1.442695, %v1686_v27 }
 0x4a4   : > { %3557 = vpow2.f32 %v1507_v14  ;;  %3236 = vmatprep.mubr.f32.mxu1 %v1810_v23  ;;  %v1661_v36 = vpop.xlane.xlu1 %1660  ;;  %v1600_v30 = vmul.f32 %v3550_v54, %v4410_v31  ;;  %v1511_v58 = vmul.f32 1.442695, %v1491_v29 }
 0x4a5   : > { %v1687_v40 = vsub.f32 %v4445_v3, %v1661_v36  ;;  %v1466_v21 = vpop.xlane.xlu0 %1465 }
 0x4a6   : > { %v1492_v35 = vsub.f32 %v4450_v4, %v1466_v21  ;;  %v1811_v38 = vadd.f32 %v1795_v59, %v1600_v30 }
 0x4a7   : > { %v1708_v47 = vmul.f32 1.442695, %v1687_v40 }
 0x4a8   : > { %v1513_v37 = vmul.f32 1.442695, %v1492_v35  ;;  %3237 = vmatmul.mubr.f32.vlgmr.msra.gmra.mxu1 %v1811_v38  ;;  %v1663_v62 = vpop.xlane.xlu1 %1662 }
 0x4a9   : > { %3559 = vpow2.f32 %v1708_v47  ;;  %v1468_v44 = vpop.xlane.xlu0 %1467  ;;  %v1688_v1 = vsub.f32 %v4455_v51, %v1663_v62 }
 0x4aa   : > { %3561 = vpow2.f32 %v1513_v37  ;;  %v1493_v31 = vsub.f32 %v4460_v61, %v1468_v44 }
 0x4ab   : > { %3563 = vpow2.f32 %v1706_v42  ;;  %v1710_v43 = vmul.f32 1.442695, %v1688_v1 }
 0x4ac   : > { %3565 = vpow2.f32 %v1511_v58  ;;  %v1665_v3 = vpop.xlane.xlu1 %1664  ;;  %v1515_v49 = vmul.f32 1.442695, %v1493_v31 }
 0x4ad   : > { %v1689_v60 = vsub.f32 %v4465_v10, %v1665_v3  ;;  %v1470_v4 = vpop.xlane.xlu0 %1469 }
 0x4ae   : > { %v3552_v39 = vpop.eup %3551  ;;  %v1494_v0 = vsub.f32 %v4470_v12, %v1470_v4 }
 0x4af   : > { %v3554_v2 = vpop.eup %3553  ;;  %v1712_v63 = vmul.f32 1.442695, %v1689_v60  ;;  %v4571_v45 = vsel %vm4380_vm2, %v3552_v39, 0.0 }
 0x4b0   : > { %v3556_v5 = vpop.eup %3555  ;;  %v1517_v51 = vmul.f32 1.442695, %v1494_v0  ;;  %v1667_v57 = vpop.xlane.xlu1 %1666  ;;  %1752 = vadd.xlane.f32.xlu1 %v4571_v45  ;;  %v4576_v61 = vsel %vm1421_vm3, %v3554_v2, 0.0 }
 0x4b1   : > { %v3558_v10 = vpop.eup %3557  ;;  %3567 = vpow2.f32 %v1712_v63  ;;  %v1472_v12 = vpop.xlane.xlu0 %1471  ;;  %1557 = vadd.xlane.f32.xlu0 %v4576_v61  ;;  %v1690_v6 = vsub.f32 %v4475_v16, %v1667_v57  ;;  %v4582_v8 = vsel %vm4380_vm2, %v3556_v5, 0.0 }
 0x4b2   : > { %3569 = vpow2.f32 %v1517_v51  ;;  %v1495_v9 = vsub.f32 %v4480_v18, %v1472_v12  ;;  %v4588_v13 = vsel %vm1421_vm3, %v3558_v10, 0.0 }
 0x4b3   : > { %3571 = vpow2.f32 %v1710_v43  ;;  %v1714_v48 = vmul.f32 1.442695, %v1690_v6 }
 0x4b4   : > { %3573 = vpow2.f32 %v1515_v49  ;;  %v1669_v11 = vpop.xlane.xlu1 %1668  ;;  %1750 = vadd.xlane.f32.xlu1 %v4582_v8  ;;  %v1519_v54 = vmul.f32 1.442695, %v1495_v9 }
 0x4b5   : > { %v1691_v14 = vsub.f32 %v4485_v22, %v1669_v11  ;;  %v1474_v15 = vpop.xlane.xlu0 %1473  ;;  %1555 = vadd.xlane.f32.xlu0 %v4588_v13 }
 0x4b6   : > { %v3560_v16 = vpop.eup %3559  ;;  %v1496_v17 = vsub.f32 %v4490_v26, %v1474_v15 }
 0x4b7   : > { %v3562_v19 = vpop.eup %3561  ;;  %v1716_v52 = vmul.f32 1.442695, %v1691_v14  ;;  %v4595_v18 = vsel %vm4380_vm2, %v3560_v16, 0.0 }
 0x4b8   : > { %v3564_v23 = vpop.eup %3563  ;;  %v1521_v27 = vmul.f32 1.442695, %v1496_v17  ;;  %v1671_v59 = vpop.xlane.xlu1 %1670  ;;  %1756 = vadd.xlane.f32.xlu1 %v4595_v18  ;;  %v4600_v22 = vsel %vm1421_vm3, %v3562_v19, 0.0 }
 0x4b9   : > { %v3566_v29 = vpop.eup %3565  ;;  %3575 = vpow2.f32 %v1716_v52  ;;  %v1476_v26 = vpop.xlane.xlu0 %1475  ;;  %1561 = vadd.xlane.f32.xlu0 %v4600_v22  ;;  %v1692_v36 = vsub.f32 %v4495_v28, %v1671_v59  ;;  %v4606_v30 = vsel %vm4380_vm2, %v3564_v23, 0.0 }
 0x4ba   : > { %3577 = vpow2.f32 %v1521_v27  ;;  %v1497_v40 = vsub.f32 %v4500_v20, %v1476_v26  ;;  %v4612_v35 = vsel %vm1421_vm3, %v3566_v29, 0.0 }
 0x4bb   : > { %3579 = vpow2.f32 %v1714_v48  ;;  %v1718_v37 = vmul.f32 1.442695, %v1692_v36 }
 0x4bc   : > { %3581 = vpow2.f32 %v1519_v54  ;;  %v1673_v21 = vpop.xlane.xlu1 %1672  ;;  %1754 = vadd.xlane.f32.xlu1 %v4606_v30  ;;  %v1523_v1 = vmul.f32 1.442695, %v1497_v40 }
 0x4bd   : > { %v1693_v38 = vsub.f32 %v4505_v32, %v1673_v21  ;;  %v1478_v42 = vpop.xlane.xlu0 %1477  ;;  %1559 = vadd.xlane.f32.xlu0 %v4612_v35 }
 0x4be   : > { %v3568_v28 = vpop.eup %3567  ;;  %v1498_v47 = vsub.f32 %v4510_v34, %v1478_v42 }
 0x4bf   : > { %v3570_v58 = vpop.eup %3569  ;;  %v1720_v62 = vmul.f32 1.442695, %v1693_v38  ;;  %v4619_v20 = vsel %vm4380_vm2, %v3568_v28, 0.0 }
 0x4c0   : > { %v3572_v44 = vpop.eup %3571  ;;  %v1525_v31 = vmul.f32 1.442695, %v1498_v47  ;;  %v1675_v3 = vpop.xlane.xlu1 %1674  ;;  %1760 = vadd.xlane.f32.xlu1 %v4619_v20  ;;  %v4624_v32 = vsel %vm1421_vm3, %v3570_v58, 0.0 }
 0x4c1   : > { %v3574_v60 = vpop.eup %3573  ;;  %3583 = vpow2.f32 %v1720_v62  ;;  %v1480_v34 = vpop.xlane.xlu0 %1479  ;;  %1565 = vadd.xlane.f32.xlu0 %v4624_v32  ;;  %v1694_v4 = vsub.f32 %v4515_v24, %v1675_v3  ;;  %v4630_v39 = vsel %vm4380_vm2, %v3572_v44, 0.0 }
 0x4c2   : > { %3585 = vpow2.f32 %v1525_v31  ;;  %v1499_v0 = vsub.f32 %v4520_v41, %v1480_v34  ;;  %v4636_v43 = vsel %vm1421_vm3, %v3574_v60, 0.0 }
 0x4c3   : > { %3587 = vpow2.f32 %v1718_v37  ;;  %v1722_v57 = vmul.f32 1.442695, %v1694_v4 }
 0x4c4   : > { %3589 = vpow2.f32 %v1523_v1  ;;  %v1677_v2 = vpop.xlane.xlu1 %1676  ;;  %1758 = vadd.xlane.f32.xlu1 %v4630_v39  ;;  %v1527_v6 = vmul.f32 1.442695, %v1499_v0 }
 0x4c5   : > { %v1695_v63 = vsub.f32 %v4525_v25, %v1677_v2  ;;  %v1482_v5 = vpop.xlane.xlu0 %1481  ;;  %1563 = vadd.xlane.f32.xlu0 %v4636_v43 }
 0x4c6   : > { %v3576_v24 = vpop.eup %3575  ;;  %v1500_v49 = vsub.f32 %v4530_v46, %v1482_v5  ;;  %v2025_v5 = vld [vmem:[#allocation10 + $0x78] sm:$0xff] }
 0x4c7   : > { %v3578_v51 = vpop.eup %3577  ;;  %v1724_v10 = vmul.f32 1.442695, %v1695_v63  ;;  %v4643_v41 = vsel %vm4380_vm2, %v3576_v24, 0.0  ;;  %v4719_v63 = vld [vmem:[#allocation12] sm:$0xff]  ;;  %v2024_v24 = vld [vmem:[#allocation10 + $0x70] sm:$0xff]  ;;  %3260 = vmatprep.subr.mxu1 %v2025_v5 }
 0x4c8   : > { %v3580_v12 = vpop.eup %3579  ;;  %v1529_v9 = vmul.f32 1.442695, %v1500_v49  ;;  %1764 = vadd.xlane.f32.xlu1 %v4643_v41  ;;  %v1679_v11 = vpop.xlane.xlu1 %1678  ;;  %v4648_v25 = vsel %vm1421_vm3, %v3578_v51, 0.0  ;;  %3261 = vmatpush3.msra.mxu1 %v2025_v5  ;;  %v2355_v7 = vsel %vm1632_vm1, %v4719_v63, 0.0  ;;  %v2023_v51 = vld [vmem:[#allocation10 + $0x68] sm:$0xff] }
 0x4c9   : > { %v3582_v14 = vpop.eup %3581  ;;  %3591 = vpow2.f32 %v1724_v10  ;;  %v1696_v46 = vsub.f32 %v4535_v50, %v1679_v11  ;;  %1569 = vadd.xlane.f32.xlu0 %v4648_v25  ;;  %v1484_v15 = vpop.xlane.xlu0 %1483  ;;  %v4655_v19 = vsel %vm4380_vm2, %v3580_v12, 0.0  ;;  %3262 = vmatprep.subr.mxu1 %v2024_v24  ;;  %v2021_v10 = vld [vmem:[#allocation10 + $0x58] sm:$0xff]  ;;  %v2020_v12 = vld [vmem:[#allocation10 + $0x50] sm:$0xff] }
 0x4ca   : > { %3593 = vpow2.f32 %v1529_v9  ;;  %v1501_v16 = vsub.f32 %v4540_v33, %v1484_v15  ;;  %v4660_v50 = vsel %vm1421_vm3, %v3582_v14, 0.0  ;;  %3263 = vmatpush3.msra.mxu1 %v2024_v24  ;;  %v2018_v9 = vld [vmem:[#allocation10 + $0x40] sm:$0xff]  ;;  %v2017_v11 = vld [vmem:[#allocation10 + $0x38] sm:$0xff]  ;;  %v2016_v14 = vld [vmem:[#allocation10 + $0x30] sm:$0xff] }
 0x4cb   : > { %3595 = vpow2.f32 %v1722_v57  ;;  %v1726_v17 = vmul.f32 1.442695, %v1696_v46  ;;  %3264 = vmatprep.subr.mxu1 %v2023_v51  ;;  %v2022_v57 = vld [vmem:[#allocation10 + $0x60] sm:$0xff]  ;;  %v2015_v46 = vld [vmem:[#allocation10 + $0x28] sm:$0xff] }
 0x4cc   : > { %3597 = vpow2.f32 %v1527_v6  ;;  %v1531_v48 = vmul.f32 1.442695, %v1501_v16  ;;  %1762 = vadd.xlane.f32.xlu1 %v4655_v19  ;;  %v1681_v52 = vpop.xlane.xlu1 %1680  ;;  %3265 = vmatpush3.msra.mxu1 %v2023_v51  ;;  %v2019_v6 = vld [vmem:[#allocation10 + $0x48] sm:$0xff]  ;;  %v2014_v15 = vld [vmem:[#allocation10 + $0x20] sm:$0xff]  ;;  %v2013_v16 = vld [vmem:[#allocation10 + $0x18] sm:$0xff] }
 0x4cd   : > { %v1697_v23 = vsub.f32 %v4545_v53, %v1681_v52  ;;  %1567 = vadd.xlane.f32.xlu0 %v4660_v50  ;;  %v1486_v33 = vpop.xlane.xlu0 %1485  ;;  %3599 = vpow2.f32 %v1726_v17  ;;  %3266 = vmatprep.subr.mxu1 %v2022_v57  ;;  %v2012_v17 = vld [vmem:[#allocation10 + $0x10] sm:$0xff]  ;;  %v2010_v52 = vld [vmem:[#allocation10] sm:$0xff] }
 0x4ce   : > { %v3584_v54 = vpop.eup %3583  ;;  %v1502_v27 = vsub.f32 %v4550_v56, %v1486_v33  ;;  %3601 = vpow2.f32 %v1531_v48  ;;  %3267 = vmatpush3.msra.mxu1 %v2022_v57  ;;  %v2011_v48 = vld [vmem:[#allocation10 + $0x8] sm:$0xff] }
 0x4cf   : > { %v3586_v59 = vpop.eup %3585  ;;  %v1728_v29 = vmul.f32 1.442695, %v1697_v23  ;;  %v4667_v26 = vsel %vm4380_vm2, %v3584_v54, 0.0  ;;  %3268 = vmatprep.subr.mxu1 %v2021_v10 }
 0x4d0   : > { %v3588_v36 = vpop.eup %3587  ;;  %v1533_v40 = vmul.f32 1.442695, %v1502_v27  ;;  %1768 = vadd.xlane.f32.xlu1 %v4667_v26  ;;  %v4672_v53 = vsel %vm1421_vm3, %v3586_v59, 0.0  ;;  %3269 = vmatpush3.msra.mxu1 %v2021_v10 }
 0x4d1   : > { %v3590_v21 = vpop.eup %3589  ;;  %1573 = vadd.xlane.f32.xlu0 %v4672_v53  ;;  %3603 = vpow2.f32 %v1728_v29  ;;  %v4677_v56 = vsel %vm4380_vm2, %v3588_v36, 0.0  ;;  %3270 = vmatprep.subr.mxu1 %v2020_v12 }
 0x4d2   : > { %3605 = vpow2.f32 %v1533_v40  ;;  %v4682_v38 = vsel %vm1421_vm3, %v3590_v21, 0.0  ;;  %3271 = vmatpush3.msra.mxu1 %v2020_v12 }
 0x4d3   : > { %3272 = vmatprep.subr.mxu1 %v2019_v6 }
 0x4d4   : > { %1766 = vadd.xlane.f32.xlu1 %v4677_v56  ;;  %3273 = vmatpush3.msra.mxu1 %v2019_v6 }
 0x4d5   : > { %1571 = vadd.xlane.f32.xlu0 %v4682_v38  ;;  %3274 = vmatprep.subr.mxu1 %v2018_v9 }
 0x4d6   : > { %v3592_v42 = vpop.eup %3591  ;;  %3275 = vmatpush3.msra.mxu1 %v2018_v9 }
 0x4d7   : > { %v3594_v28 = vpop.eup %3593  ;;  %v4687_v47 = vsel %vm4380_vm2, %v3592_v42, 0.0  ;;  %3276 = vmatprep.subr.mxu1 %v2017_v11 }
 0x4d8   : > { %v3596_v58 = vpop.eup %3595  ;;  %1772 = vadd.xlane.f32.xlu1 %v4687_v47  ;;  %v4692_v37 = vsel %vm1421_vm3, %v3594_v28, 0.0  ;;  %3277 = vmatpush3.msra.mxu1 %v2017_v11 }
 0x4d9   : > { %v3598_v62 = vpop.eup %3597  ;;  %1577 = vadd.xlane.f32.xlu0 %v4692_v37  ;;  %v4697_v44 = vsel %vm4380_vm2, %v3596_v58, 0.0  ;;  %3278 = vmatprep.subr.mxu1 %v2016_v14 }
 0x4da   : > { %v3600_v1 = vpop.eup %3599  ;;  %v4702_v31 = vsel %vm1421_vm3, %v3598_v62, 0.0  ;;  %3279 = vmatpush3.msra.mxu1 %v2016_v14 }
 0x4db   : > { %v3602_v3 = vpop.eup %3601  ;;  %v4707_v60 = vsel %vm4380_vm2, %v3600_v1, 0.0  ;;  %3280 = vmatprep.subr.mxu1 %v2015_v46 }
 0x4dc   : > { %1770 = vadd.xlane.f32.xlu1 %v4697_v44  ;;  %v4712_v4 = vsel %vm1421_vm3, %v3602_v3, 0.0  ;;  %3281 = vmatpush3.msra.mxu1 %v2015_v46 }
 0x4dd   : > { %1575 = vadd.xlane.f32.xlu0 %v4702_v31  ;;  %3282 = vmatprep.subr.mxu1 %v2014_v15 }
 0x4de   : > { %v3604_v34 = vpop.eup %3603  ;;  %3283 = vmatpush3.msra.mxu1 %v2014_v15 }
 0x4df   : > { %v3606_v0 = vpop.eup %3605  ;;  %v4717_v2 = vsel %vm4380_vm2, %v3604_v34, 0.0  ;;  %3284 = vmatprep.subr.mxu1 %v2013_v16 }
 0x4e0   : > { %1774 = vadd.xlane.f32.xlu1 %v4707_v60  ;;  %v4724_v49 = vsel %vm1421_vm3, %v3606_v0, 0.0  ;;  %3285 = vmatpush3.msra.mxu1 %v2013_v16 }
 0x4e1   : > { %1579 = vadd.xlane.f32.xlu0 %v4712_v4  ;;  %3286 = vmatprep.subr.mxu1 %v2012_v17 }
 0x4e2   : > { %3287 = vmatpush3.msra.mxu1 %v2012_v17 }
 0x4e3   : > { %3288 = vmatprep.subr.mxu1 %v2011_v48 }
 0x4e4   : > { %1776 = vadd.xlane.f32.xlu1 %v4717_v2  ;;  %3289 = vmatpush3.msra.mxu1 %v2011_v48 }
 0x4e5   : > { %1581 = vadd.xlane.f32.xlu0 %v4724_v49  ;;  %3290 = vmatprep.subr.mxu1 %v2010_v52 }
 0x4e6   : > { %3291 = vmatpush3.msra.mxu1 %v2010_v52 }
 0x4e9   : > { %2386 = vadd.xlane.f32.xlu0 %v2355_v7 }
 0x539   : > { %v1753_v23 = vpop.xlane.xlu1 %1752 }
 0x53a   : > { %v1558_v33 = vpop.xlane.xlu0 %1557  ;;  %3607 = vrcp.f32 %v1753_v23 }
 0x53b   : > { %3609 = vrcp.f32 %v1558_v33 }
 0x53d   : > { %v1751_v54 = vpop.xlane.xlu1 %1750 }
 0x53e   : > { %3611 = vrcp.f32 %v1751_v54  ;;  %v1556_v27 = vpop.xlane.xlu0 %1555 }
 0x53f   : > { %3613 = vrcp.f32 %v1556_v27 }
 0x541   : > { %v1757_v59 = vpop.xlane.xlu1 %1756 }
 0x542   : > { %v1562_v29 = vpop.xlane.xlu0 %1561  ;;  %3615 = vrcp.f32 %v1757_v59 }
 0x543   : > { %3617 = vrcp.f32 %v1562_v29 }
 0x545   : > { %v1755_v36 = vpop.xlane.xlu1 %1754 }
 0x546   : > { %3619 = vrcp.f32 %v1755_v36  ;;  %v1560_v40 = vpop.xlane.xlu0 %1559 }
 0x547   : > { %3621 = vrcp.f32 %v1560_v40  ;;  %v3608_v21 = vpop.eup %3607 }
 0x548   : > { %v3610_v42 = vpop.eup %3609  ;;  %v1797_v0 = vmul.f32 %v3608_v21, %v4571_v45 }
 0x549   : > { %v1761_v28 = vpop.xlane.xlu1 %1760  ;;  %v1602_v34 = vmul.f32 %v3610_v42, %v4576_v61 }
 0x54a   : > { %v1566_v58 = vpop.xlane.xlu0 %1565  ;;  %3623 = vrcp.f32 %v1761_v28 }
 0x54b   : > { %v3612_v62 = vpop.eup %3611  ;;  %3625 = vrcp.f32 %v1566_v58  ;;  %v1813_v10 = vadd.f32 %v1797_v0, %v1602_v34 }
 0x54c   : > { %v3614_v1 = vpop.eup %3613  ;;  %v1796_v3 = vmul.f32 %v3612_v62, %v4582_v8 }
 0x54d   : > { %v1759_v5 = vpop.xlane.xlu1 %1758  ;;  %v1601_v24 = vmul.f32 %v3614_v1, %v4588_v13 }
 0x54e   : > { %3627 = vrcp.f32 %v1759_v5  ;;  %v1564_v7 = vpop.xlane.xlu0 %1563 }
 0x54f   : > { %3629 = vrcp.f32 %v1564_v7  ;;  %v1812_v51 = vadd.f32 %v1796_v3, %v1601_v24  ;;  %v3616_v57 = vpop.eup %3615 }
 0x550   : > { %v3618_v12 = vpop.eup %3617  ;;  %v1799_v13 = vmul.f32 %v3616_v57, %v4595_v18 }
 0x551   : > { %3239 = vmatprep.mubr.f32.mxu1 %v1812_v51  ;;  %v1765_v6 = vpop.xlane.xlu1 %1764  ;;  %v1604_v61 = vmul.f32 %v3618_v12, %v4600_v22 }
 0x552   : > { %3240 = vmatmul.mubr.f32.gmra.mxu1 %v1813_v10  ;;  %v1570_v9 = vpop.xlane.xlu0 %1569  ;;  %3631 = vrcp.f32 %v1765_v6 }
 0x553   : > { %v3620_v11 = vpop.eup %3619  ;;  %3633 = vrcp.f32 %v1570_v9  ;;  %v1815_v48 = vadd.f32 %v1799_v13, %v1604_v61 }
 0x554   : > { %v3622_v8 = vpop.eup %3621  ;;  %v1798_v45 = vmul.f32 %v3620_v11, %v4606_v30 }
 0x555   : > { %v1763_v14 = vpop.xlane.xlu1 %1762  ;;  %v1603_v46 = vmul.f32 %v3622_v8, %v4612_v35 }
 0x556   : > { %3635 = vrcp.f32 %v1763_v14  ;;  %v1568_v15 = vpop.xlane.xlu0 %1567 }
 0x557   : > { %3637 = vrcp.f32 %v1568_v15  ;;  %v1814_v16 = vadd.f32 %v1798_v45, %v1603_v46  ;;  %v3624_v17 = vpop.eup %3623 }
 0x558   : > { %v3626_v52 = vpop.eup %3625  ;;  %v1801_v35 = vmul.f32 %v3624_v17, %v4619_v20 }
 0x559   : > { %3242 = vmatprep.mubr.f32.mxu1 %v1814_v16  ;;  %v1769_v23 = vpop.xlane.xlu1 %1768  ;;  %v1606_v22 = vmul.f32 %v3626_v52, %v4624_v32 }
 0x55a   : > { %3243 = vmatmul.mubr.f32.gmra.mxu1 %v1815_v48  ;;  %v1574_v33 = vpop.xlane.xlu0 %1573  ;;  %3639 = vrcp.f32 %v1769_v23 }
 0x55b   : > { %v3628_v54 = vpop.eup %3627  ;;  %3641 = vrcp.f32 %v1574_v33  ;;  %v1817_v21 = vadd.f32 %v1801_v35, %v1606_v22 }
 0x55c   : > { %v3630_v30 = vpop.eup %3629  ;;  %v1800_v18 = vmul.f32 %v3628_v54, %v4630_v39 }
 0x55d   : > { %v1767_v27 = vpop.xlane.xlu1 %1766  ;;  %v1605_v59 = vmul.f32 %v3630_v30, %v4636_v43 }
 0x55e   : > { %3643 = vrcp.f32 %v1767_v27  ;;  %v1572_v29 = vpop.xlane.xlu0 %1571 }
 0x55f   : > { %3645 = vrcp.f32 %v1572_v29  ;;  %v1816_v36 = vadd.f32 %v1800_v18, %v1605_v59  ;;  %v3632_v40 = vpop.eup %3631 }
 0x560   : > { %v3634_v42 = vpop.eup %3633  ;;  %v1803_v43 = vmul.f32 %v3632_v40, %v4643_v41 }
 0x561   : > { %3245 = vmatprep.mubr.f32.mxu1 %v1816_v36  ;;  %v1773_v28 = vpop.xlane.xlu1 %1772  ;;  %v1608_v32 = vmul.f32 %v3634_v42, %v4648_v25 }
 0x562   : > { %3246 = vmatmul.mubr.f32.gmra.mxu1 %v1817_v21  ;;  %v1578_v58 = vpop.xlane.xlu0 %1577  ;;  %3647 = vrcp.f32 %v1773_v28 }
 0x563   : > { %v3636_v62 = vpop.eup %3635  ;;  %3649 = vrcp.f32 %v1578_v58  ;;  %v1819_v24 = vadd.f32 %v1803_v43, %v1608_v32 }
 0x564   : > { %v3638_v39 = vpop.eup %3637  ;;  %v1802_v20 = vmul.f32 %v3636_v62, %v4655_v19 }
 0x565   : > { %v1771_v1 = vpop.xlane.xlu1 %1770  ;;  %v1607_v3 = vmul.f32 %v3638_v39, %v4660_v50 }
 0x566   : > { %3651 = vrcp.f32 %v1771_v1  ;;  %v1576_v34 = vpop.xlane.xlu0 %1575 }
 0x567   : > { %3653 = vrcp.f32 %v1576_v34  ;;  %v1818_v0 = vadd.f32 %v1802_v20, %v1607_v3  ;;  %v3640_v5 = vpop.eup %3639 }
 0x568   : > { %v3642_v7 = vpop.eup %3641  ;;  %v1805_v50 = vmul.f32 %v3640_v5, %v4667_v26 }
 0x569   : > { %3248 = vmatprep.mubr.f32.mxu1 %v1818_v0  ;;  %v1775_v51 = vpop.xlane.xlu1 %1774  ;;  %v1610_v10 = vmul.f32 %v3642_v7, %v4672_v53 }
 0x56a   : > { %3655 = vrcp.f32 %v1775_v51  ;;  %3249 = vmatmul.mubr.f32.gmra.mxu1 %v1819_v24  ;;  %v1580_v57 = vpop.xlane.xlu0 %1579 }
 0x56b   : > { %v3644_v19 = vpop.eup %3643  ;;  %3657 = vrcp.f32 %v1580_v57  ;;  %v1821_v45 = vadd.f32 %v1805_v50, %v1610_v10 }
 0x56c   : > { %v3646_v25 = vpop.eup %3645  ;;  %v1804_v41 = vmul.f32 %v3644_v19, %v4677_v56 }
 0x56d   : > { %v1777_v12 = vpop.xlane.xlu1 %1776  ;;  %v1609_v6 = vmul.f32 %v3646_v25, %v4682_v38  ;;  %v3238_v38 = vpop.f32.mrf.mxu1 }
 0x56e   : > { %3659 = vrcp.f32 %v1777_v12  ;;  %v1582_v9 = vpop.xlane.xlu0 %1581 }
 0x56f   : > { %3661 = vrcp.f32 %v1582_v9  ;;  %v1820_v11 = vadd.f32 %v1804_v41, %v1609_v6  ;;  %v3648_v8 = vpop.eup %3647  ;;  %v1915_v18 = vpop.f32.mrf.mxu1 }
 0x570   : > { %v3650_v61 = vpop.eup %3649  ;;  %v1807_v15 = vmul.f32 %v3648_v8, %v4687_v47  ;;  %v4759_v47 = vld [vmem:[%s4842_s4] ss:$0 sm:$0xff] }
 0x571   : > { %3251 = vmatprep.mubr.f32.mxu1 %v1820_v11  ;;  %v1612_v26 = vmul.f32 %v3650_v61, %v4692_v37  ;;  %v1916_v59 = vadd.f32 %v4759_v47, %v1915_v18 }
 0x572   : > { %3252 = vmatmul.mubr.f32.gmra.mxu1 %v1821_v45  ;;  %v2387_v13 = vpop.xlane.xlu0 %2386 }
 0x573   : > { %v3652_v14 = vpop.eup %3651  ;;  %v2388_v46 = vrot.slane %v2387_v13, 4  ;;  %v1823_v54 = vadd.f32 %v1807_v15, %v1612_v26  ;;  %v1994_v21 = vmax.f32 %v1916_v59, 0.0 }
 0x574   : > { %v3654_v56 = vpop.eup %3653  ;;  %v1806_v53 = vmul.f32 %v3652_v14, %v4697_v44 }
 0x575   : > { %v1611_v16 = vmul.f32 %v3654_v56, %v4702_v31  ;;  %v2389_v17 = vadd.f32 %v2388_v46, %v2387_v13 }
 0x577   : > { %v3656_v48 = vpop.eup %3655  ;;  %v1822_v52 = vadd.f32 %v1806_v53, %v1611_v16  ;;  %v2390_v23 = vrot.slane %v2389_v17, 2 }
 0x578   : > { %v3658_v33 = vpop.eup %3657  ;;  %v1808_v30 = vmul.f32 %v3656_v48, %v4707_v60 }
 0x579   : > { %3254 = vmatprep.mubr.f32.mxu1 %v1822_v52  ;;  %v1613_v22 = vmul.f32 %v3658_v33, %v4712_v4  ;;  %v2391_v44 = vadd.f32 %v2390_v23, %v2389_v17  ;;  %v1921_v4 = vadd.f32 %v3238_v38, %v4759_v47  ;;  %v4781_v33 = vld [vmem:[%s4844_s6] ss:$0 sm:$0xff] }
 0x57a   : > { %3255 = vmatmul.mubr.f32.gmra.mxu1 %v1823_v54 }
 0x57b   : > { %v3660_v37 = vpop.eup %3659  ;;  %v1824_v31 = vadd.f32 %v1808_v30, %v1613_v22  ;;  %v2392_v35 = vrot.slane %v2391_v44, 1  ;;  %v1995_v42 = vmax.f32 %v1921_v4, 0.0 }
 0x57c   : > { %v3662_v27 = vpop.eup %3661  ;;  %v1809_v29 = vmul.f32 %v3660_v37, %v4717_v2 }
 0x57d   : > { %3257 = vmatprep.mubr.f32.mxu1 %v1824_v31  ;;  %v1614_v60 = vmul.f32 %v3662_v27, %v4724_v49  ;;  %v2393_v36 = vadd.f32 %v2392_v35, %v2391_v44 }
 0x57f   : > { %v1825_v40 = vadd.f32 %v1809_v29, %v1614_v60  ;;  %3316 = vpush %v2393_v36 }
 0x581   : > { %3258 = vmatmul.mubr.f32.gmra.mxu1 %v1825_v40 }
 0x582   : > { %3292 = vmatprep.mubr.f32.mxu1 %v1994_v21 }
 0x585   : > { %3293 = vmatmul.mubr.f32.vlgmr.msra.gmra.mxu1 %v1995_v42 }
 0x5b0   : > { %s3317_s29 = spop %3316 }
 0x5b1   : > { %s2395_s30 = smul.f32 2.0, %s3317_s29  ;;  %s2401_s15 = ssub.f32 64.0, %s3317_s29 }
 0x5b3   : > { %s2396_s16 = sadd.f32 1e-06, %s2395_s30  ;;  %s2402_s27 = smul.f32 2.0, %s2401_s15 }
 0x5b5   : > { %v2397_v28 = vstv %s2396_s16  ;;  %s2403_s18 = sadd.f32 1e-06, %s2402_s27 }
 0x5b6   : > { %3663 = vrcp.f32 %v2397_v28 }
 0x5b7   : > { %v2404_v2 = vstv %s2403_s18 }
 0x5b8   : > { %3665 = vrcp.f32 %v2404_v2 }
 0x5c3   : > { %v3664_v49 = vpop.eup %3663 }
 0x5c4   : > { %3318 = vpush %v3664_v49  ;;  %v2521_v49 = vsub.f32 1.0, %v4719_v63 }
 0x5c5   : > { %v3666_v58 = vpop.eup %3665 }
 0x5c6   : > { %3320 = vpush %v3666_v58 }
 0x5f5   : > { %s3319_s22 = spop %3318 }
 0x5f6   : > { %s2400_s28 = smul.f32 64.0, %s3319_s22 }
 0x5f7   : > { %s3321_s25 = spop %3320 }
 0x5f8   : > { %s2407_s26 = smul.f32 64.0, %s3321_s25  ;;  %v2424_v58 = vstv %s2400_s28 }
 0x612   : > { %v3241_v62 = vpop.f32.mrf.mxu1 }
 0x613   : > { %v1931_v39 = vadd.f32 %v3241_v62, %v4759_v47  ;;  %v2537_v62 = vstv %s2407_s26 }
 0x614   : > { %v1925_v20 = vpop.f32.mrf.mxu1 }
 0x615   : > { %v1926_v32 = vadd.f32 %v4759_v47, %v1925_v20  ;;  %v1997_v1 = vmax.f32 %v1931_v39, 0.0  ;;  %v2425_v39 = vmul.f32 %v2424_v58, %v4719_v63 }
 0x617   : > { %v1996_v43 = vmax.f32 %v1926_v32, 0.0  ;;  %v2538_v32 = vmul.f32 %v2537_v62, %v2521_v49 }
 0x619   : > { %3295 = vmatprep.mubr.f32.mxu1 %v1996_v43 }
 0x61a   : > { %v3244_v3 = vpop.f32.mrf.mxu1  ;;  %3296 = vmatmul.mubr.f32.gmra.mxu1 %v1997_v1 }
 0x61b   : > { %v1941_v34 = vadd.f32 %v3244_v3, %v4759_v47 }
 0x61c   : > { %v1935_v0 = vpop.f32.mrf.mxu1 }
 0x61d   : > { %v1936_v5 = vadd.f32 %v4759_v47, %v1935_v0  ;;  %v1999_v7 = vmax.f32 %v1941_v34, 0.0 }
 0x61f   : > { %v1998_v24 = vmax.f32 %v1936_v5, 0.0 }
 0x621   : > { %3298 = vmatprep.mubr.f32.mxu1 %v1998_v24 }
 0x622   : > { %v3247_v51 = vpop.f32.mrf.mxu1  ;;  %3299 = vmatmul.mubr.f32.gmra.mxu1 %v1999_v7 }
 0x623   : > { %v1951_v57 = vadd.f32 %v3247_v51, %v4759_v47 }
 0x624   : > { %v1945_v19 = vpop.f32.mrf.mxu1 }
 0x625   : > { %v1946_v25 = vadd.f32 %v4759_v47, %v1945_v19  ;;  %v2001_v10 = vmax.f32 %v1951_v57, 0.0 }
 0x627   : > { %v2000_v41 = vmax.f32 %v1946_v25, 0.0 }
 0x629   : > { %3301 = vmatprep.mubr.f32.mxu1 %v2000_v41 }
 0x62a   : > { %v3250_v50 = vpop.f32.mrf.mxu1  ;;  %3302 = vmatmul.mubr.f32.gmra.mxu1 %v2001_v10 }
 0x62b   : > { %v1961_v12 = vadd.f32 %v3250_v50, %v4759_v47 }
 0x62c   : > { %v1955_v6 = vpop.f32.mrf.mxu1 }
 0x62d   : > { %v1956_v9 = vadd.f32 %v4759_v47, %v1955_v6  ;;  %v2003_v8 = vmax.f32 %v1961_v12, 0.0 }
 0x62f   : > { %v2002_v11 = vmax.f32 %v1956_v9, 0.0 }
 0x631   : > { %3304 = vmatprep.mubr.f32.mxu1 %v2002_v11 }
 0x632   : > { %v3253_v45 = vpop.f32.mrf.mxu1  ;;  %3305 = vmatmul.mubr.f32.gmra.mxu1 %v2003_v8 }
 0x633   : > { %v1971_v61 = vadd.f32 %v3253_v45, %v4759_v47 }
 0x634   : > { %v1965_v13 = vpop.f32.mrf.mxu1 }
 0x635   : > { %v1966_v14 = vadd.f32 %v4759_v47, %v1965_v13  ;;  %v2005_v56 = vmax.f32 %v1971_v61, 0.0 }
 0x637   : > { %v2004_v46 = vmax.f32 %v1966_v14, 0.0 }
 0x639   : > { %3307 = vmatprep.mubr.f32.mxu1 %v2004_v46 }
 0x63a   : > { %v3256_v53 = vpop.f32.mrf.mxu1  ;;  %3308 = vmatmul.mubr.f32.gmra.mxu1 %v2005_v56 }
 0x63b   : > { %v1981_v26 = vadd.f32 %v3256_v53, %v4759_v47 }
 0x63c   : > { %v1975_v15 = vpop.f32.mrf.mxu1 }
 0x63d   : > { %v1976_v38 = vadd.f32 %v4759_v47, %v1975_v15  ;;  %v2007_v17 = vmax.f32 %v1981_v26, 0.0 }
 0x63f   : > { %v2006_v16 = vmax.f32 %v1976_v38, 0.0 }
 0x641   : > { %v3259_v48 = vpop.f32.mrf.mxu1  ;;  %3310 = vmatprep.mubr.f32.mxu1 %v2006_v16 }
 0x642   : > { %3311 = vmatmul.mubr.f32.gmra.mxu1 %v2007_v17  ;;  %v1991_v52 = vadd.f32 %v3259_v48, %v4759_v47 }
 0x643   : > { %v1985_v23 = vpop.f32.mrf.mxu1 }
 0x644   : > { %v1986_v54 = vadd.f32 %v4759_v47, %v1985_v23  ;;  %v2009_v44 = vmax.f32 %v1991_v52, 0.0 }
 0x645   : > { %v3294_v30 = vpop.f32.mrf.mxu1 }
 0x646   : > { %v2008_v18 = vmax.f32 %v1986_v54, 0.0  ;;  %v2105_v22 = vadd.f32 %v3294_v30, %v4781_v33 }
 0x647   : > { %v2099_v37 = vpop.f32.mrf.mxu1 }
 0x648   : > { %v2179_v31 = vmul.f32 0.5, %v2105_v22  ;;  %v2100_v35 = vadd.f32 %v4781_v33, %v2099_v37  ;;  %3313 = vmatprep.mubr.f32.mxu1 %v2008_v18 }
 0x649   : > { %3314 = vmatmul.mubr.f32.gmra.mxu1 %v2009_v44 }
 0x64a   : > { %3667 = vtanh.f32 %v2179_v31  ;;  %v2178_v27 = vmul.f32 0.5, %v2100_v35 }
 0x64c   : > { %3669 = vtanh.f32 %v2178_v27 }
 0x657   : > { %v3668_v59 = vpop.eup %3667 }
 0x658   : > { %v2211_v29 = vadd.f32 1.0, %v3668_v59 }
 0x659   : > { %v3670_v60 = vpop.eup %3669 }
 0x65a   : > { %v2227_v36 = vmul.f32 0.5, %v2211_v29  ;;  %v2210_v4 = vadd.f32 1.0, %v3670_v60 }
 0x65c   : > { %v2243_v47 = vmax.f32 %v2227_v36, 0.0001  ;;  %v2226_v40 = vmul.f32 0.5, %v2210_v4 }
 0x65e   : > { %v2259_v21 = vmin.f32 %v2243_v47, 0.9999  ;;  %v2242_v42 = vmax.f32 %v2226_v40, 0.0001 }
 0x660   : > { %2275 = vst [vmem:[#allocation13 + $0x8] sm:$0xff] %v2259_v21  ;;  %v2258_v28 = vmin.f32 %v2242_v42, 0.9999 }
 0x662   : > { %2274 = vst [vmem:[#allocation13] sm:$0xff] %v2258_v28  ;;  %v2408_v2 = vsub.f32 1.0, %v2258_v28  ;;  %3671 = vlog2.f32 %v2258_v28  ;;  %v2554_v43 = vmul.f32 %v2258_v28, %v2258_v28 }
 0x664   : > { %3673 = vlog2.f32 %v2408_v2  ;;  %v2441_v20 = vmul.f32 %v2408_v2, %v2408_v2  ;;  %v2570_v5 = vmul.f32 %v2554_v43, %v2538_v32 }
 0x666   : > { %v2457_v0 = vmul.f32 %v2441_v20, %v2425_v39 }
 0x66f   : > { %v3672_v1 = vpop.eup %3671 }
 0x670   : > { %v2474_v3 = vmul.f32 0.6931472, %v3672_v1 }
 0x671   : > { %v3674_v34 = vpop.eup %3673 }
 0x672   : > { %v2587_v24 = vmul.f32 0.6931472, %v3674_v34  ;;  %v2505_v7 = vmul.f32 %v2474_v3, %v2457_v0 }
 0x674   : > { %v2618_v51 = vmul.f32 %v2587_v24, %v2570_v5 }
 0x676   : > { %v2634_v57 = vadd.f32 %v2618_v51, %v2505_v7 }
 0x678   : > { %v2650_v19 = vsel %vm1632_vm1, %v2634_v57, 0.0 }
 0x679   : > { %2681 = vadd.xlane.f32.xlu1 %v2650_v19 }
 0x6da   : > { %v3297_v25 = vpop.f32.mrf.mxu1 }
 0x6db   : > { %v2115_v41 = vadd.f32 %v3297_v25, %v4781_v33 }
 0x6dc   : > { %v2109_v63 = vpop.f32.mrf.mxu1 }
 0x6dd   : > { %v2181_v10 = vmul.f32 0.5, %v2115_v41  ;;  %v2110_v50 = vadd.f32 %v4781_v33, %v2109_v63 }
 0x6df   : > { %3675 = vtanh.f32 %v2181_v10  ;;  %v2180_v12 = vmul.f32 0.5, %v2110_v50 }
 0x6e1   : > { %3677 = vtanh.f32 %v2180_v12 }
 0x6e2   : > { %v3300_v6 = vpop.f32.mrf.mxu1 }
 0x6e3   : > { %v2125_v9 = vadd.f32 %v3300_v6, %v4781_v33 }
 0x6e4   : > { %v2119_v11 = vpop.f32.mrf.mxu1 }
 0x6e5   : > { %v2183_v8 = vmul.f32 0.5, %v2125_v9  ;;  %v2120_v45 = vadd.f32 %v4781_v33, %v2119_v11 }
 0x6e7   : > { %3679 = vtanh.f32 %v2183_v8  ;;  %v2182_v55 = vmul.f32 0.5, %v2120_v45 }
 0x6e9   : > { %3681 = vtanh.f32 %v2182_v55 }
 0x6ea   : > { %v3303_v61 = vpop.f32.mrf.mxu1 }
 0x6eb   : > { %v2135_v13 = vadd.f32 %v3303_v61, %v4781_v33 }
 0x6ec   : > { %v3676_v14 = vpop.eup %3675  ;;  %v2129_v46 = vpop.f32.mrf.mxu1 }
 0x6ed   : > { %v2213_v56 = vadd.f32 1.0, %v3676_v14  ;;  %v2185_v53 = vmul.f32 0.5, %v2135_v13  ;;  %v2130_v26 = vadd.f32 %v4781_v33, %v2129_v46 }
 0x6ee   : > { %v3678_v15 = vpop.eup %3677 }
 0x6ef   : > { %v2229_v38 = vmul.f32 0.5, %v2213_v56  ;;  %v2212_v16 = vadd.f32 1.0, %v3678_v15  ;;  %3683 = vtanh.f32 %v2185_v53  ;;  %v2184_v17 = vmul.f32 0.5, %v2130_v26 }
 0x6f1   : > { %v2245_v48 = vmax.f32 %v2229_v38, 0.0001  ;;  %v2228_v52 = vmul.f32 0.5, %v2212_v16  ;;  %3685 = vtanh.f32 %v2184_v17 }
 0x6f2   : > { %v3306_v23 = vpop.f32.mrf.mxu1 }
 0x6f3   : > { %v2261_v54 = vmin.f32 %v2245_v48, 0.9999  ;;  %v2244_v30 = vmax.f32 %v2228_v52, 0.0001  ;;  %v2145_v18 = vadd.f32 %v3306_v23, %v4781_v33 }
 0x6f4   : > { %v3680_v22 = vpop.eup %3679  ;;  %v2139_v44 = vpop.f32.mrf.mxu1 }
 0x6f5   : > { %2277 = vst [vmem:[#allocation13 + $0x18] sm:$0xff] %v2261_v54  ;;  %v2260_v37 = vmin.f32 %v2244_v30, 0.9999  ;;  %v2215_v31 = vadd.f32 1.0, %v3680_v22  ;;  %v2187_v35 = vmul.f32 0.5, %v2145_v18  ;;  %v2140_v27 = vadd.f32 %v4781_v33, %v2139_v44 }
 0x6f6   : > { %v3682_v59 = vpop.eup %3681 }
 0x6f7   : > { %2276 = vst [vmem:[#allocation13 + $0x10] sm:$0xff] %v2260_v37  ;;  %v2231_v29 = vmul.f32 0.5, %v2215_v31  ;;  %v2214_v60 = vadd.f32 1.0, %v3682_v59  ;;  %3687 = vtanh.f32 %v2187_v35  ;;  %v2186_v36 = vmul.f32 0.5, %v2140_v27 }
 0x6f9   : > { %v2247_v4 = vmax.f32 %v2231_v29, 0.0001  ;;  %v2230_v47 = vmul.f32 0.5, %v2214_v60  ;;  %3689 = vtanh.f32 %v2186_v36 }
 0x6fa   : > { %v3309_v40 = vpop.f32.mrf.mxu1 }
 0x6fb   : > { %v2263_v21 = vmin.f32 %v2247_v4, 0.9999  ;;  %v2246_v42 = vmax.f32 %v2230_v47, 0.0001  ;;  %v2155_v28 = vadd.f32 %v3309_v40, %v4781_v33 }
 0x6fc   : > { %v3684_v2 = vpop.eup %3683  ;;  %v2149_v49 = vpop.f32.mrf.mxu1 }
 0x6fd   : > { %2279 = vst [vmem:[#allocation13 + $0x28] sm:$0xff] %v2263_v21  ;;  %v2262_v58 = vmin.f32 %v2246_v42, 0.9999  ;;  %v2217_v62 = vadd.f32 1.0, %v3684_v2  ;;  %v2189_v39 = vmul.f32 0.5, %v2155_v28  ;;  %v2150_v20 = vadd.f32 %v4781_v33, %v2149_v49 }
 0x6fe   : > { %v3686_v32 = vpop.eup %3685 }
 0x6ff   : > { %2278 = vst [vmem:[#allocation13 + $0x20] sm:$0xff] %v2262_v58  ;;  %v2233_v43 = vmul.f32 0.5, %v2217_v62  ;;  %v2216_v1 = vadd.f32 1.0, %v3686_v32  ;;  %3691 = vtanh.f32 %v2189_v39  ;;  %v2188_v3 = vmul.f32 0.5, %v2150_v20 }
 0x701   : > { %v2249_v34 = vmax.f32 %v2233_v43, 0.0001  ;;  %v2232_v0 = vmul.f32 0.5, %v2216_v1  ;;  %3693 = vtanh.f32 %v2188_v3 }
 0x702   : > { %v3312_v5 = vpop.f32.mrf.mxu1  ;;  %v2682_v24 = vpop.xlane.xlu1 %2681 }
 0x703   : > { %v2265_v7 = vmin.f32 %v2249_v34, 0.9999  ;;  %v2248_v51 = vmax.f32 %v2232_v0, 0.0001  ;;  %v2165_v57 = vadd.f32 %v3312_v5, %v4781_v33  ;;  %v2683_v19 = vrot.slane %v2682_v24, 4 }
 0x704   : > { %v3688_v25 = vpop.eup %3687  ;;  %v2159_v41 = vpop.f32.mrf.mxu1 }
 0x705   : > { %2281 = vst [vmem:[#allocation13 + $0x38] sm:$0xff] %v2265_v7  ;;  %v2264_v63 = vmin.f32 %v2248_v51, 0.9999  ;;  %v2219_v10 = vadd.f32 1.0, %v3688_v25  ;;  %v2191_v50 = vmul.f32 0.5, %v2165_v57  ;;  %v2684_v12 = vadd.f32 %v2683_v19, %v2682_v24 }
 0x706   : > { %v3690_v6 = vpop.eup %3689  ;;  %v2160_v9 = vadd.f32 %v4781_v33, %v2159_v41 }
 0x707   : > { %2280 = vst [vmem:[#allocation13 + $0x30] sm:$0xff] %v2264_v63  ;;  %v2235_v11 = vmul.f32 0.5, %v2219_v10  ;;  %v2218_v8 = vadd.f32 1.0, %v3690_v6  ;;  %3695 = vtanh.f32 %v2191_v50  ;;  %v2685_v45 = vrot.slane %v2684_v12, 2 }
 0x708   : > { %v2190_v55 = vmul.f32 0.5, %v2160_v9 }
 0x709   : > { %v2251_v61 = vmax.f32 %v2235_v11, 0.0001  ;;  %v2234_v13 = vmul.f32 0.5, %v2218_v8  ;;  %v2686_v14 = vadd.f32 %v2685_v45, %v2684_v12  ;;  %v3315_v46 = vpop.f32.mrf.mxu1 }
 0x70a   : > { %3697 = vtanh.f32 %v2190_v55  ;;  %v2175_v56 = vadd.f32 %v3315_v46, %v4781_v33 }
 0x70b   : > { %v2267_v53 = vmin.f32 %v2251_v61, 0.9999  ;;  %v2250_v26 = vmax.f32 %v2234_v13, 0.0001  ;;  %v2169_v15 = vpop.f32.mrf.mxu1  ;;  %v2687_v38 = vrot.slane %v2686_v14, 1 }
 0x70c   : > { %v3692_v16 = vpop.eup %3691  ;;  %v2193_v17 = vmul.f32 0.5, %v2175_v56  ;;  %v2170_v48 = vadd.f32 %v4781_v33, %v2169_v15 }
 0x70d   : > { %2283 = vst [vmem:[#allocation13 + $0x48] sm:$0xff] %v2267_v53  ;;  %v2266_v52 = vmin.f32 %v2250_v26, 0.9999  ;;  %v2221_v23 = vadd.f32 1.0, %v3692_v16  ;;  %v2688_v54 = vadd.f32 %v2687_v38, %v2686_v14 }
 0x70e   : > { %v3694_v30 = vpop.eup %3693  ;;  %3699 = vtanh.f32 %v2193_v17  ;;  %v2192_v18 = vmul.f32 0.5, %v2170_v48 }
 0x70f   : > { %2282 = vst [vmem:[#allocation13 + $0x40] sm:$0xff] %v2266_v52  ;;  %v2237_v22 = vmul.f32 0.5, %v2221_v23  ;;  %v2220_v44 = vadd.f32 1.0, %v3694_v30  ;;  %3322 = vpush %v2688_v54 }
 0x710   : > { %3701 = vtanh.f32 %v2192_v18 }
 0x711   : > { %v2253_v37 = vmax.f32 %v2237_v22, 0.0001  ;;  %v2236_v31 = vmul.f32 0.5, %v2220_v44 }
 0x713   : > { %v2269_v35 = vmin.f32 %v2253_v37, 0.9999  ;;  %v2252_v27 = vmax.f32 %v2236_v31, 0.0001 }
 0x714   : > { %v3696_v59 = vpop.eup %3695 }
 0x715   : > { %2285 = vst [vmem:[#allocation13 + $0x58] sm:$0xff] %v2269_v35  ;;  %v2268_v29 = vmin.f32 %v2252_v27, 0.9999  ;;  %v2223_v33 = vadd.f32 1.0, %v3696_v59 }
 0x717   : > { %v3698_v60 = vpop.eup %3697  ;;  %2284 = vst [vmem:[#allocation13 + $0x50] sm:$0xff] %v2268_v29  ;;  %v2239_v36 = vmul.f32 0.5, %v2223_v33 }
 0x718   : > { %v2222_v4 = vadd.f32 1.0, %v3698_v60 }
 0x719   : > { %v2255_v47 = vmax.f32 %v2239_v36, 0.0001 }
 0x71a   : > { %v2238_v40 = vmul.f32 0.5, %v2222_v4 }
 0x71b   : > { %v3700_v21 = vpop.eup %3699  ;;  %v2271_v42 = vmin.f32 %v2255_v47, 0.9999 }
 0x71c   : > { %v2254_v28 = vmax.f32 %v2238_v40, 0.0001  ;;  %v2225_v2 = vadd.f32 1.0, %v3700_v21 }
 0x71d   : > { %v3702_v49 = vpop.eup %3701  ;;  %2287 = vst [vmem:[#allocation13 + $0x68] sm:$0xff] %v2271_v42 }
 0x71e   : > { %v2270_v58 = vmin.f32 %v2254_v28, 0.9999  ;;  %v2241_v62 = vmul.f32 0.5, %v2225_v2  ;;  %v2224_v39 = vadd.f32 1.0, %v3702_v49 }
 0x720   : > { %2286 = vst [vmem:[#allocation13 + $0x60] sm:$0xff] %v2270_v58  ;;  %v2257_v20 = vmax.f32 %v2241_v62, 0.0001  ;;  %v2240_v32 = vmul.f32 0.5, %v2224_v39 }
 0x722   : > { %v2273_v43 = vmin.f32 %v2257_v20, 0.9999  ;;  %v2256_v1 = vmax.f32 %v2240_v32, 0.0001 }
 0x724   : > { %2289 = vst [vmem:[#allocation13 + $0x78] sm:$0xff] %v2273_v43  ;;  %v2272_v3 = vmin.f32 %v2256_v1, 0.9999 }
 0x726   : > { %2288 = vst [vmem:[#allocation13 + $0x70] sm:$0xff] %v2272_v3 }
 0x740   : > { %s3323_s3 = spop %3322 }
 0x741   : > { %s2690_s12 = ssub.f32 0.0, %s3323_s3 }
 0x743   : > { %s2693_s24 = smul.f32 0.015625, %s2690_s12 }
 0x745   : > { %2695 = sst [smem:[#allocation14]] %s2693_s24 }
 0x746 PF: > { %p3372_p2 = scmp.eq.s32.totalorder %s4013_s13, 1  ;;  %s3940_s0 = smov [#allocation13]  }
 0x747   : > { %s2702_s5 = sshll.u32 %s3940_s0, 4  ;;  %s2703_s5 = int_to_ptr.vmem [resolvable:$true] %s2702_s5 }
 0x748   : > { %s3837_s19 = scalar_lea.vmem %s2703_s5, 2048  ;;  %p3844_p8 = scmp.lt.s32.totalorder %s2703_s5, %s2703_s5 }
 0x749   : > { %p3838_p12 = scmp.ne.s32.totalorder %s2703_s5, %s3837_s19  ;;  %p3845_p6 = scmp.lt.s32.totalorder %s3837_s19, %s3837_s19 }
 0x74b   : > { %p3839_p3 = pnand %p3838_p12, %p3372_p2  ;;  %p3846_p4 = por %p3845_p6, %p3844_p8 }
 0x74d   : > { %p3840_p7 = pneg %p3839_p3 }
 0x74f   : > { %p3847_p1 = pnand %p3846_p4, %p3840_p7 }
 0x751   : > { %3850 = shalt.err (!%p3847_p1)
}
 0x752   : > { %s3941_s20 = smov 128   ;;  %s3942_s23 = smov 8  }
 0x753   : > { %3341 = dma.vmem_to_hbm [thread:$0]  (%p3372_p2), %s2703_s5, 2048, %s4846_s8, [#allocation5], %s3941_s20, %s3941_s20, %s3942_s23  }
 0x754   : > { %s3943_s15 = smov [#allocation14]  }
 0x755   : > { %3343 = dma.smem_to_hbm (%p3372_p2), %s3943_s15, 16, %s4847_s9, [#allocation6]  }
 0x756   : > { %3904 = dma.done.wait (%p3372_p2), [#allocation5], 2048  }
 0x757   : > { %3906 = vsyncadd (%p3372_p2), [#allocation5], 4294965248 }
 0x758   : > { %3908 = dma.done.wait (%p3372_p2), [#allocation6], 16  }
 0x759   : > { %3910 = vsyncadd (%p3372_p2), [#allocation6], 4294967280 }
 0x75a   : > { %2726 = sfence }
 0x75b PF: > { %p26_p10 = scmp.ge.s32.totalorder %s4016_s14, 4   ;;  %s4871_s30 = smov %s3917_s10 }
 0x75c   : > { %s4872_s10 = smov %s3921_s11  ;;  %s4873_s11 = smov %s4026_s17 }
 0x75d   : > { %s4874_s12 = smov %s4016_s14  ;;  %28 = sbr.rel (!%p26_p10) target bundleno = 13 (0xd), region = 132 }
 0x762   :  { %2732 = vsyncpa [#allocation4], 1 }
 0x763   :  { %2734 = vsyncpa [#allocation4 + $0x1], 1 }
 0x764   :  { %2735 = vsyncpa [#allocation8], 1 }
 0x765   :  { %2737 = vsyncpa [#allocation8 + $0x1], 1 }
 0x766   :  { %2738 = vsyncpa [#allocation11], 1 }
 0x767   :  { %2739 = vsyncpa [#allocation5], 1 }
 0x768   :  { %2741 = vsyncpa [#allocation5 + $0x1], 1 }
 0x769   :  { %2742 = vsyncpa [#allocation6], 1 }
 0x76a   :  { %2744 = vsyncpa [#allocation6 + $0x1], 1 }

</bundles_post_ra>
